<compile_context>
chip_gen: v7x
topology: tpu7x:2x2x1
jax: 0.10.0
libtpu: 0.0.40
codegen_flags: <defaults>
</compile_context>

<pallas_src>
import functools
import math

import jax
import jax.numpy as jnp
from jax.experimental import pallas as pl
from jax.experimental.pallas import tpu as pltpu


def _round_up(x, m):
    return ((x + m - 1) // m) * m


# ---------------------------------------------------------------------------
# Fused path (small graphs): projection + masked softmax + aggregation in a
# single kernel.  Grid over query-row tiles only; the key axis is fully
# resident, so no online-softmax bookkeeping is needed.
# ---------------------------------------------------------------------------
def _gat_fused_kernel(h_ref, w_ref, wh1_ref, wh2t_ref, adj_ref, out_ref,
                      *, alpha, concat, mask_pad):
    # Value projection for all (padded) nodes, f32 MXU accumulation.
    wh = jnp.dot(h_ref[...], w_ref[...], preferred_element_type=jnp.float32)

    adj = adj_ref[...].astype(jnp.float32)          # int8 {1,0,-1} -> f32
    e = wh1_ref[...] + wh2t_ref[...]                # [tq, Np] broadcast add
    e = jnp.where(e > 0, e, alpha * e)              # LeakyReLU(alpha)
    e = jnp.where(adj > 0, e, jnp.float32(-9e15))   # -9e15 (not -inf): matches
    if mask_pad:                                    # the module for isolated rows
        e = jnp.where(adj < 0, jnp.float32(-jnp.inf), e)   # padded cols: exact 0

    m = jnp.max(e, axis=-1, keepdims=True)
    p = jnp.exp(e - m)
    att = p * pl.reciprocal(jnp.sum(p, axis=-1, keepdims=True), approx=True)
    out = jnp.dot(att, wh, preferred_element_type=jnp.float32)
    if concat:
        # NOTE: exp(x)-1 (matches the reference); expm1 would be marginally
        # more accurate near 0.
        out = jnp.where(out > 0, out, jnp.exp(out) - 1.0)
    out_ref[...] = out.astype(out_ref.dtype)


def _gat_fused(h_p, w, wh1, wh2t, adj_i8, *, n_pad, tq, f_in, f_out, alpha,
               concat, mask_pad, out_dtype):
    kernel = functools.partial(_gat_fused_kernel, alpha=alpha, concat=concat,
                               mask_pad=mask_pad)
    return pl.pallas_call(
        kernel,
        out_shape=jax.ShapeDtypeStruct((n_pad, f_out), out_dtype),
        grid=(n_pad // tq,),
        in_specs=[
            pl.BlockSpec((n_pad, f_in), lambda i: (0, 0)),   # full h (values)
            pl.BlockSpec((f_in, f_out), lambda i: (0, 0)),   # W
            pl.BlockSpec((tq, 1), lambda i: (i, 0)),         # query logits
            pl.BlockSpec((1, n_pad), lambda i: (0, 0)),      # key logits (lane-dense)
            pl.BlockSpec((tq, n_pad), lambda i: (i, 0)),     # adj rows (int8)
        ],
        out_specs=pl.BlockSpec((tq, f_out), lambda i: (i, 0)),
        compiler_params=pltpu.CompilerParams(
            dimension_semantics=("parallel",),
            vmem_limit_bytes=32 * 1024 * 1024,
        ),
    )(h_p, w, wh1, wh2t, adj_i8)


# ---------------------------------------------------------------------------
# Flash path (large graphs).
# Kernel 1: node-feature projection, Wh emitted in bf16 (half-width value
#           stream for the attention kernel).
# ---------------------------------------------------------------------------
def _gat_project_kernel(h_ref, w_ref, wh_ref):
    wh_ref[...] = jnp.dot(
        h_ref[...], w_ref[...], preferred_element_type=jnp.float32
    ).astype(wh_ref.dtype)


# Kernel 2: masked attention + aggregation with online (flash-style) softmax.
# Grid = (row tiles [parallel], col tiles [reduction / arbitrary]).
# Scalar-prefetched per-tile nonzero counts let fully masked tiles skip the
# exp/mask/matmul body entirely.
def _gat_flash_kernel(counts_ref, wh1_ref, wh2t_ref, adj_ref, whv_ref, out_ref,
                      m_sc, l_sc, acc_sc, *, alpha, concat, mask_pad):
    qi = pl.program_id(0)
    ki = pl.program_id(1)

    @pl.when(ki == 0)
    def _init():
        m_sc[...] = jnp.full(m_sc.shape, -jnp.inf, m_sc.dtype)
        l_sc[...] = jnp.zeros(l_sc.shape, l_sc.dtype)
        acc_sc[...] = jnp.zeros(acc_sc.shape, acc_sc.dtype)

    @pl.when(counts_ref[qi, ki] > 0)     # skip fully masked adjacency tiles
    def _compute():
        adj = adj_ref[...].astype(jnp.float32)
        e = wh1_ref[...] + wh2t_ref[...]                     # [tq, tk]
        e = jnp.where(e > 0, e, alpha * e)                   # LeakyReLU(alpha)
        e = jnp.where(adj > 0, e, jnp.float32(-9e15))
        if mask_pad:
            e = jnp.where(adj < 0, jnp.float32(-jnp.inf), e)

        m_prev = m_sc[...]
        m_new = jnp.maximum(m_prev, jnp.max(e, axis=-1, keepdims=True))
        corr = jnp.exp(m_prev - m_new)
        p = jnp.exp(e - m_new)                               # f32 exp (v5e-safe)
        l_sc[...] = corr * l_sc[...] + jnp.sum(p, axis=-1, keepdims=True)
        # bf16 p x bf16 Wh on the MXU, f32 accumulation.
        acc_sc[...] = corr * acc_sc[...] + jnp.dot(
            p.astype(whv_ref.dtype), whv_ref[...],
            preferred_element_type=jnp.float32)
        m_sc[...] = m_new

    @pl.when(ki == pl.num_programs(1) - 1)
    def _finalize():
        out = acc_sc[...] * pl.reciprocal(l_sc[...], approx=True)
        if concat:                                           # ELU (alpha = 1)
            out = jnp.where(out > 0, out, jnp.exp(out) - 1.0)
        out_ref[...] = out.astype(out_ref.dtype)


def _gat_flash(h_p, w, wh1, wh2t, adj_i8, row_deg, *, n_pad, tq, tk, f_in,
               f_out, alpha, concat, mask_pad, out_dtype, value_dtype):
    # ---- projection: Wh in bf16, row-tiled, megacore-parallel ----
    wh = pl.pallas_call(
        _gat_project_kernel,
        out_shape=jax.ShapeDtypeStruct((n_pad, f_out), value_dtype),
        grid=(n_pad // tq,),
        in_specs=[
            pl.BlockSpec((tq, f_in), lambda i: (i, 0)),
            pl.BlockSpec((f_in, f_out), lambda i: (0, 0)),
        ],
        out_specs=pl.BlockSpec((tq, f_out), lambda i: (i, 0)),
        compiler_params=pltpu.CompilerParams(
            dimension_semantics=("parallel",),
            vmem_limit_bytes=32 * 1024 * 1024,
        ),
    )(h_p, w)

    nq, nk = n_pad // tq, n_pad // tk
    # Per-tile edge counts for the sparse tile-skip (scalar prefetch).
    tiles = (adj_i8 > 0).astype(jnp.int32).reshape(nq, tq, nk, tk).sum(axis=(1, 3))
    # Rows with zero edges must still visit every tile so the module's
    # uniform-softmax (-9e15) fallback is reproduced exactly (and l != 0).
    iso_q = jnp.any(row_deg.reshape(nq, tq) == 0, axis=1)
    counts = jnp.where(iso_q[:, None], jnp.maximum(tiles, 1), tiles).astype(jnp.int32)

    kernel = functools.partial(_gat_flash_kernel, alpha=alpha, concat=concat,
                               mask_pad=mask_pad)
    return pl.pallas_call(
        kernel,
        out_shape=jax.ShapeDtypeStruct((n_pad, f_out), out_dtype),
        grid_spec=pltpu.PrefetchScalarGridSpec(
            num_scalar_prefetch=1,
            grid=(nq, nk),
            in_specs=[
                pl.BlockSpec((tq, 1), lambda qi, ki, cnt: (qi, 0)),     # query logits
                pl.BlockSpec((1, tk), lambda qi, ki, cnt: (0, ki)),     # key logits
                pl.BlockSpec((tq, tk), lambda qi, ki, cnt: (qi, ki)),   # adj tile (int8)
                pl.BlockSpec((tk, f_out), lambda qi, ki, cnt: (ki, 0)), # Wh values (bf16)
            ],
            out_specs=pl.BlockSpec((tq, f_out), lambda qi, ki, cnt: (qi, 0)),
            scratch_shapes=[
                pltpu.VMEM((tq, 1), jnp.float32),      # running max
                pltpu.VMEM((tq, 1), jnp.float32),      # running denom
                pltpu.VMEM((tq, f_out), jnp.float32),  # f32 accumulator
            ],
        ),
        compiler_params=pltpu.CompilerParams(
            dimension_semantics=("parallel", "arbitrary"),
            vmem_limit_bytes=32 * 1024 * 1024,
        ),
    )(counts, wh1, wh2t, adj_i8, wh)


# ---------------------------------------------------------------------------
# Public wrapper.
# ---------------------------------------------------------------------------
def graph_attention_layer(h, adj, W, a, *, alpha=0.2, concat=True, dropout=0.0,
                          force_flash=False, fused_max_nodes=1024,
                          tile_q=128, tile_k=256, value_dtype=jnp.bfloat16):
    """GAT layer forward. h:[N,Fin], adj:[N,N], W:[Fin,Fout], a:[2*Fout,1]."""
    del dropout  # TODO(synk): attention dropout not implemented (default 0.0).
    n, f_in = h.shape
    f_out = W.shape[1]
    assert adj.shape == (n, n)
    assert a.shape == (2 * f_out, 1)

    n_pad = _round_up(n, 128)
    mask_pad = n_pad != n
    tq = tile_q if n_pad % tile_q == 0 else 128
    tk = tile_k if n_pad % tile_k == 0 else 128

    # Fold the attention vector into W once (host side, O(Fin*Fout)) and
    # compute the per-node logits as two tiny gemvs.  (h @ wa2) is (N, 1)
    # contiguous, so reshaping it to a lane-dense (1, N) is free: no transpose
    # op and no lane-width-1 pallas output stores.
    h32 = h.astype(jnp.float32)
    w32 = W.astype(jnp.float32)
    wa1 = w32 @ a[:f_out].astype(jnp.float32)        # (Fin, 1)
    wa2 = w32 @ a[f_out:].astype(jnp.float32)        # (Fin, 1)
    wh1 = h32 @ wa1                                  # (N, 1)  query-side logit
    wh2t = (h32 @ wa2).reshape(1, n)                 # (1, N)  key-side logit

    # int8 adjacency: 1 = edge, 0 = no edge, -1 = padded key column.
    adj_i8 = (adj > 0).astype(jnp.int8)
    if mask_pad:
        pad = n_pad - n
        h32 = jnp.pad(h32, ((0, pad), (0, 0)))
        wh1 = jnp.pad(wh1, ((0, pad), (0, 0)))
        wh2t = jnp.pad(wh2t, ((0, 0), (0, pad)))
        adj_i8 = jnp.pad(adj_i8, ((0, pad), (0, pad)))
        adj_i8 = adj_i8.at[:, n:].set(jnp.int8(-1))

    out_dtype = h.dtype
    if n_pad <= fused_max_nodes and not force_flash:
        out = _gat_fused(h32, w32, wh1, wh2t, adj_i8, n_pad=n_pad, tq=tq,
                         f_in=f_in, f_out=f_out, alpha=alpha, concat=concat,
                         mask_pad=mask_pad, out_dtype=out_dtype)
    else:
        row_deg = jnp.pad((adj > 0).sum(axis=1).astype(jnp.int32),
                          (0, n_pad - n), constant_values=1)
        out = _gat_flash(h32, w32, wh1, wh2t, adj_i8, row_deg, n_pad=n_pad,
                         tq=tq, tk=tk, f_in=f_in, f_out=f_out, alpha=alpha,
                         concat=concat, mask_pad=mask_pad, out_dtype=out_dtype,
                         value_dtype=value_dtype)
    return out[:n] if mask_pad else out


# ---------------------------------------------------------------------------
# Pure-JAX reference (mirrors the PyTorch module).
# ---------------------------------------------------------------------------
def _gat_reference(h, adj, W, a, alpha, concat):
    f_out = W.shape[1]
    wh = h @ W
    e = wh @ a[:f_out] + (wh @ a[f_out:]).T
    e = jnp.where(e > 0, e, alpha * e)
    att = jax.nn.softmax(jnp.where(adj > 0, e, jnp.float32(-9e15)), axis=1)
    hp = att @ wh
    if concat:
        hp = jnp.where(hp > 0, hp, jnp.exp(hp) - 1.0)
    return hp


if __name__ == "__main__":
    N = 256       # nodes (2x2 tile grid of 128-tiles on the flash path)
    F_IN = 32     # in_features
    F_OUT = 64    # out_features
    ALPHA = 0.2
    CONCAT = True

    key = jax.random.PRNGKey(0)
    k_h, k_adj, k_w, k_a = jax.random.split(key, 4)

    # xavier_uniform_(gain=1.414) mirroring the module's init.
    bw = 1.414 * math.sqrt(6.0 / (F_IN + F_OUT))
    W = jax.random.uniform(k_w, (F_IN, F_OUT), jnp.float32, -bw, bw)
    ba = 1.414 * math.sqrt(6.0 / (2 * F_OUT + 1))
    a = jax.random.uniform(k_a, (2 * F_OUT, 1), jnp.float32, -ba, ba)

    # Node features and a ~10%-dense 0/1 adjacency with self-loops.
    h = jax.random.normal(k_h, (N, F_IN), jnp.float32)
    adj = (jax.random.uniform(k_adj, (N, N), jnp.float32) < 0.1).astype(jnp.float32)
    adj = jnp.maximum(adj, jnp.eye(N, dtype=jnp.float32))

    ref = _gat_reference(h, adj, W, a, ALPHA, CONCAT)

    # 1) fused single-kernel path (default for small graphs): all-f32.
    out_fused = graph_attention_layer(h, adj, W, a, alpha=ALPHA, concat=CONCAT)
    out_fused = jax.block_until_ready(out_fused)
    assert out_fused.shape == (N, F_OUT)
    assert jnp.allclose(out_fused, ref, atol=2e-2, rtol=2e-2), (
        float(jnp.max(jnp.abs(out_fused - ref))))

    # 2) flash (online-softmax) path: bf16 value stream + tile-skip.  Looser
    #    tolerance because Wh and p are fed to the MXU in bf16.
    out_flash = graph_attention_layer(h, adj, W, a, alpha=ALPHA, concat=CONCAT,
                                      force_flash=True)
    out_flash = jax.block_until_ready(out_flash)
    assert out_flash.shape == (N, F_OUT)
    assert jnp.allclose(out_flash, ref, atol=5e-2, rtol=5e-2), (
        float(jnp.max(jnp.abs(out_flash - ref))))

    # 3) ragged N (exercises the 128-padding + padded-column masking).
    N2 = 200
    h2, adj2 = h[:N2], adj[:N2, :N2]
    ref2 = _gat_reference(h2, adj2, W, a, ALPHA, CONCAT)
    out2 = graph_attention_layer(h2, adj2, W, a, alpha=ALPHA, concat=CONCAT)
    out2 = jax.block_until_ready(out2)
    assert out2.shape == (N2, F_OUT)
    assert jnp.allclose(out2, ref2, atol=2e-2, rtol=2e-2), (
        float(jnp.max(jnp.abs(out2 - ref2))))
    out2f = graph_attention_layer(h2, adj2, W, a, alpha=ALPHA, concat=CONCAT,
                                  force_flash=True)
    out2f = jax.block_until_ready(out2f)
    assert jnp.allclose(out2f, ref2, atol=5e-2, rtol=5e-2), (
        float(jnp.max(jnp.abs(out2f - ref2))))

    print("KERNEL_OK")
</pallas_src>

<mosaic_0001>
module attributes {stable_mosaic.version = 11 : i64} {
  func.func @_gat_fused_kernel(%arg0: i32, %arg1: memref<256x32xf32, #tpu.memory_space<vmem>>, %arg2: memref<32x64xf32, #tpu.memory_space<vmem>>, %arg3: memref<128x1xf32, #tpu.memory_space<vmem>>, %arg4: memref<1x256xf32, #tpu.memory_space<vmem>>, %arg5: memref<128x256xi8, #tpu.memory_space<vmem>>, %arg6: memref<128x64xf32, #tpu.memory_space<vmem>>) attributes {dimension_semantics = [#tpu.dimension_semantics<parallel>], iteration_bounds = array<i64: 2>, scalar_prefetch = 0 : i64, scratch_operands = 0 : i64, tpu.core_type = #tpu.core_type<tc>, window_params = [{pipeline_mode = #tpu.pipeline_mode<synchronous>, transform_indices = @transform_0, window_bounds = array<i64: 256, 32>}, {pipeline_mode = #tpu.pipeline_mode<synchronous>, transform_indices = @transform_1, window_bounds = array<i64: 32, 64>}, {transform_indices = @transform_2, window_bounds = array<i64: 128, 1>}, {pipeline_mode = #tpu.pipeline_mode<synchronous>, transform_indices = @transform_3, window_bounds = array<i64: 1, 256>}, {transform_indices = @transform_4, window_bounds = array<i64: 128, 256>}, {transform_indices = @transform_5, window_bounds = array<i64: 128, 64>}]} {
    %c0 = arith.constant 0 : index
    %c0_0 = arith.constant 0 : index
    %0 = vector.load %arg1[%c0, %c0_0] : memref<256x32xf32, #tpu.memory_space<vmem>>, vector<256x32xf32>
    %c0_1 = arith.constant 0 : index
    %c0_2 = arith.constant 0 : index
    %1 = vector.load %arg2[%c0_1, %c0_2] : memref<32x64xf32, #tpu.memory_space<vmem>>, vector<32x64xf32>
    %cst = arith.constant dense<0.000000e+00> : vector<256x64xf32>
    %2 = tpu.matmul %0, %1, %cst {dimension_numbers = #tpu.dot_dimension_numbers<[1], [0], [0], [1], [0, 0, 1, 1], [], []>} : vector<256x32xf32>, vector<32x64xf32>, vector<256x64xf32> -> vector<256x64xf32>
    %c0_3 = arith.constant 0 : index
    %c0_4 = arith.constant 0 : index
    %3 = vector.load %arg5[%c0_3, %c0_4] : memref<128x256xi8, #tpu.memory_space<vmem>>, vector<128x256xi8>
    %4 = arith.sitofp %3 : vector<128x256xi8> to vector<128x256xf32>
    %c0_5 = arith.constant 0 : index
    %c0_6 = arith.constant 0 : index
    %5 = vector.load %arg3[%c0_5, %c0_6] : memref<128x1xf32, #tpu.memory_space<vmem>>, vector<128x1xf32>
    %c0_7 = arith.constant 0 : index
    %c0_8 = arith.constant 0 : index
    %6 = vector.load %arg4[%c0_7, %c0_8] : memref<1x256xf32, #tpu.memory_space<vmem>>, vector<1x256xf32>
    %7 = vector.broadcast %5 : vector<128x1xf32> to vector<128x256xf32>
    %8 = vector.broadcast %6 : vector<1x256xf32> to vector<128x256xf32>
    %9 = arith.addf %7, %8 : vector<128x256xf32>
    %cst_9 = arith.constant 0.000000e+00 : f32
    %10 = vector.broadcast %cst_9 : f32 to vector<128x256xf32>
    %11 = arith.cmpf ogt, %9, %10 : vector<128x256xf32>
    %cst_10 = arith.constant 2.000000e-01 : f32
    %12 = vector.broadcast %cst_10 : f32 to vector<128x256xf32>
    %13 = arith.mulf %12, %9 : vector<128x256xf32>
    %14 = arith.select %11, %9, %13 : vector<128x256xi1>, vector<128x256xf32>
    %cst_11 = arith.constant 0.000000e+00 : f32
    %15 = vector.broadcast %cst_11 : f32 to vector<128x256xf32>
    %16 = arith.cmpf ogt, %4, %15 : vector<128x256xf32>
    %cst_12 = arith.constant -9.000000e+15 : f32
    %17 = vector.broadcast %cst_12 : f32 to vector<128x256xf32>
    %18 = arith.select %16, %14, %17 : vector<128x256xi1>, vector<128x256xf32>
    %cst_13 = arith.constant dense<0xFF800000> : vector<128xf32>
    %19 = vector.multi_reduction <maximumf>, %18, %cst_13 [1] : vector<128x256xf32> to vector<128xf32>
    %20 = vector.shape_cast %19 : vector<128xf32> to vector<128x1xf32>
    %21 = vector.broadcast %20 : vector<128x1xf32> to vector<128x256xf32>
    %22 = arith.subf %18, %21 : vector<128x256xf32>
    %23 = math.exp %22 : vector<128x256xf32>
    %cst_14 = arith.constant dense<0.000000e+00> : vector<128xf32>
    %24 = vector.multi_reduction <add>, %23, %cst_14 [1] : vector<128x256xf32> to vector<128xf32>
    %25 = vector.shape_cast %24 : vector<128xf32> to vector<128x1xf32>
    %26 = tpu.reciprocal %25 {approx = true} : vector<128x1xf32> -> vector<128x1xf32>
    %27 = vector.broadcast %26 : vector<128x1xf32> to vector<128x256xf32>
    %28 = arith.mulf %23, %27 : vector<128x256xf32>
    %cst_15 = arith.constant dense<0.000000e+00> : vector<128x64xf32>
    %29 = tpu.matmul %28, %2, %cst_15 {dimension_numbers = #tpu.dot_dimension_numbers<[1], [0], [0], [1], [0, 0, 1, 1], [], []>} : vector<128x256xf32>, vector<256x64xf32>, vector<128x64xf32> -> vector<128x64xf32>
    %cst_16 = arith.constant 0.000000e+00 : f32
    %30 = vector.broadcast %cst_16 : f32 to vector<128x64xf32>
    %31 = arith.cmpf ogt, %29, %30 : vector<128x64xf32>
    %32 = math.exp %29 : vector<128x64xf32>
    %cst_17 = arith.constant 1.000000e+00 : f32
    %33 = vector.broadcast %cst_17 : f32 to vector<128x64xf32>
    %34 = arith.subf %32, %33 : vector<128x64xf32>
    %35 = arith.select %31, %29, %34 : vector<128x64xi1>, vector<128x64xf32>
    %c0_18 = arith.constant 0 : index
    %c0_19 = arith.constant 0 : index
    %36 = vector.load %arg6[%c0_18, %c0_19] : memref<128x64xf32, #tpu.memory_space<vmem>>, vector<128x64xf32>
    tpu.vector_store %arg6[%c0_18, %c0_19], %35 {strides = array<i32>} : memref<128x64xf32, #tpu.memory_space<vmem>>, vector<128x64xf32>,
    return
  }
  func.func @transform_0(%arg0: i32) -> (i32, i32) {
    %c0_i32 = arith.constant 0 : i32
    %c0_i32_0 = arith.constant 0 : i32
    %c0_i32_1 = arith.constant 0 : i32
    return %c0_i32, %c0_i32_0 : i32, i32
  }
  func.func @transform_1(%arg0: i32) -> (i32, i32) {
    %c0_i32 = arith.constant 0 : i32
    %c0_i32_0 = arith.constant 0 : i32
    %c0_i32_1 = arith.constant 0 : i32
    return %c0_i32, %c0_i32_0 : i32, i32
  }
  func.func @transform_2(%arg0: i32) -> (i32, i32) {
    %c0_i32 = arith.constant 0 : i32
    %c0_i32_0 = arith.constant 0 : i32
    return %arg0, %c0_i32 : i32, i32
  }
  func.func @transform_3(%arg0: i32) -> (i32, i32) {
    %c0_i32 = arith.constant 0 : i32
    %c0_i32_0 = arith.constant 0 : i32
    %c0_i32_1 = arith.constant 0 : i32
    return %c0_i32, %c0_i32_0 : i32, i32
  }
  func.func @transform_4(%arg0: i32) -> (i32, i32) {
    %c0_i32 = arith.constant 0 : i32
    %c0_i32_0 = arith.constant 0 : i32
    return %arg0, %c0_i32 : i32, i32
  }
  func.func @transform_5(%arg0: i32) -> (i32, i32) {
    %c0_i32 = arith.constant 0 : i32
    %c0_i32_0 = arith.constant 0 : i32
    return %arg0, %c0_i32 : i32, i32
  }
}

</mosaic_0001>

<bundles_post_ra>
// kernel: tpu_custom_call.1
= control target key start
LH: loop header
LB: loop body
LE: loop exit
PB: predicated region body
PF: predicated region fallthrough
CT: control target
= control target key end

     0   :  { %s2002_s18 = smov 0   ;;  %s2873_s0 = inlined_call_operand.vmem [shape: f32[256,32], index: 0, kind: input, shape index: {}]   ;;  %s2874_s1 = inlined_call_operand.vmem [shape: f32[32,64], index: 1, kind: input, shape index: {}]   ;;  %s2875_s2 = inlined_call_operand.vmem [shape: f32[256,1], index: 2, kind: input, shape index: {}]   ;;  %s2876_s3 = inlined_call_operand.vmem [shape: f32[1,256], index: 3, kind: input, shape index: {}]   ;;  %s2877_s4 = inlined_call_operand.vmem [shape: s8[256,256], index: 4, kind: input, shape index: {}]   ;;  %s2878_s5 = inlined_call_operand.vmem [shape: f32[256,64], index: 5, kind: output, shape index: {}]  }
   0x1 LB: > { %s1533_s19 = sadd.s32 4294967295, %s1969_s18   ;;  %p1537_p0 = scmp.ge.s32.totalorder %s1969_s18, 1  ;;  %s1969_s18 = sphi %s2002_s18, %s15_s18  }
   0x2   : > { %p200_p1 = scmp.lt.s32.totalorder %s1969_s18, 3 }
   0x4   : > { %p201_p2 = pnand %p1537_p0, %p200_p1 }
   0x6   : > { %204 = sbr.rel (%p201_p2) target bundleno = 757 (0x2f5), region = 40 }
   0xd   : > { %s1538_s20 = sshll.u32 %s1533_s19, 4  ;;  %v1971_v0 = vmov 0   ;;  %v285_v6 = vld [vmem:[%s2874_s1] sm:$0xff]  ;;  %v286_v7 = vld [vmem:[%s2874_s1 + $0x8] sm:$0xff]  ;;  %v287_v10 = vld [vmem:[%s2874_s1 + $0x10] sm:$0xff]  ;;  %vm289_vm0 = vcmask 261120   ;;  %v781_v55 = vlaneseq }
   0xe   : > { %1834 = vset.pattern.permute.xlu1 %v1971_v0  ;;  %1833 = vset.pattern.permute.xlu0 %v1971_v0  ;;  %p235_p3 = scmp.lt.s32.totalorder %s1538_s20, 31  ;;  %v1768_v9 = vpack.c.bf16 %v286_v7, %v285_v6  ;;  %v288_v11 = vld [vmem:[%s2874_s1 + $0x18] sm:$0xff]  ;;  %v253_v15 = vld [vmem:[%s2873_s0] sm:$0xff]  ;;  %v254_v18 = vld [vmem:[%s2873_s0 + $0x8] sm:$0xff]  ;;  %s1540_s9 = sshll.u32 %s1533_s19, 2 }
   0xf   : > { %v1772_v12 = vpack.c.bf16 %v288_v11, %v287_v10  ;;  %1720 = vmatprep.mubr.msk.f32.mxu0 %vm289_vm0, %v253_v15  ;;  %v255_v19 = vld [vmem:[%s2873_s0 + $0x10] sm:$0xff]  ;;  %v256_v22 = vld [vmem:[%s2873_s0 + $0x18] sm:$0xff]  ;;  %v257_v25 = vld [vmem:[%s2873_s0 + $0x20] sm:$0xff]  ;;  %p241_p4 = scmp.lt.s32.totalorder %s1540_s9, 7  ;;  %v782_v56 = vshrl.u32 %v781_v55, 7 }
  0x10   : > { %s2897_s20 = smov (!%p235_p3, %s1538_s20), 31  ;;  %1769 = vmatprep.subr.bf16.mxu0 %v1768_v9  ;;  %v258_v26 = vld [vmem:[%s2873_s0 + $0x28] sm:$0xff]  ;;  %v259_v29 = vld [vmem:[%s2873_s0 + $0x30] sm:$0xff]  ;;  %v260_v30 = vld [vmem:[%s2873_s0 + $0x38] sm:$0xff] }
  0x11   : > { %s1539_s21 = sshll.u32 %s2897_s20, 3  ;;  %1771 = vmatpush3.bf16.msra.mxu0 %v1768_v9  ;;  %v261_v31 = vld [vmem:[%s2873_s0 + $0x40] sm:$0xff]  ;;  %v262_v32 = vld [vmem:[%s2873_s0 + $0x48] sm:$0xff]  ;;  %v263_v33 = vld [vmem:[%s2873_s0 + $0x50] sm:$0xff]  ;;  %s2899_s9 = smov (!%p241_p4, %s1540_s9), 7  ;;  %v783_v61 = vsub.s32 0, %v782_v56 }
  0x12   : > { %s2020_s24 = scalar_lea.vmem %s2875_s2, %s1539_s21  ;;  %1773 = vmatprep.subr.bf16.mxu0 %v1772_v12  ;;  %v264_v34 = vld [vmem:[%s2873_s0 + $0x58] sm:$0xff]  ;;  %v265_v35 = vld [vmem:[%s2873_s0 + $0x60] sm:$0xff]  ;;  %v266_v36 = vld [vmem:[%s2873_s0 + $0x68] sm:$0xff]  ;;  %s1595_s10 = sshll.u32 %s2899_s9, 4  ;;  %v787_v62 = vsub.s32 1, %v782_v56 }
  0x13   : > { %v688_v1 = vld [vmem:[%s2020_s24 + $0x28] sm:$0xff]  ;;  %v686_v2 = vld [vmem:[%s2020_s24 + $0x18] sm:$0xff]  ;;  %v689_v3 = vld [vmem:[%s2020_s24 + $0x30] sm:$0xff]  ;;  %s2183_s13 = scalar_lea.vmem %s2877_s4, %s1595_s10  ;;  %s2836_s17 = scalar_lea.vmem %s2878_s5, %s1539_s21 }
  0x14   : > { %727 = vperm.xlu1 %1834, %v688_v1   ;;  %717 = vperm.xlu0 %1833, %v686_v2   ;;  %v687_v4 = vld [vmem:[%s2020_s24 + $0x20] sm:$0xff]  ;;  %v690_v8 = vld [vmem:[%s2020_s24 + $0x38] sm:$0xff]  ;;  %v693_v13 = vld [vmem:[%s2020_s24 + $0x50] sm:$0xff] }
  0x15   : > { %v691_v5 = vld [vmem:[%s2020_s24 + $0x40] sm:$0xff]  ;;  %v692_v14 = vld [vmem:[%s2020_s24 + $0x48] sm:$0xff]  ;;  %v694_v17 = vld [vmem:[%s2020_s24 + $0x58] sm:$0xff]  ;;  %1775 = vmatpush3.bf16.msra.mxu0 %v1772_v12 }
  0x16   : > { %v695_v16 = vld [vmem:[%s2020_s24 + $0x60] sm:$0xff]  ;;  %v696_v20 = vld [vmem:[%s2020_s24 + $0x68] sm:$0xff]  ;;  %v697_v23 = vld [vmem:[%s2020_s24 + $0x70] sm:$0xff] }
  0x17   : > { %v683_v21 = vld [vmem:[%s2020_s24] sm:$0xff]  ;;  %v684_v24 = vld [vmem:[%s2020_s24 + $0x8] sm:$0xff]  ;;  %v698_v27 = vld [vmem:[%s2020_s24 + $0x78] sm:$0xff] }
  0x18   : > { %732 = vperm.xlu1 %1834, %v689_v3   ;;  %722 = vperm.xlu0 %1833, %v687_v4   ;;  %v685_v28 = vld [vmem:[%s2020_s24 + $0x10] sm:$0xff]  ;;  %v268_v38 = vld [vmem:[%s2873_s0 + $0x78] sm:$0xff]  ;;  %v269_v39 = vld [vmem:[%s2873_s0 + $0x80] sm:$0xff] }
  0x19   : > { %1721 = vmatmul.mubr.msk.f32.vlgmr.msra.gmra.mrb[0].mxu0 %vm289_vm0, %v254_v18  ;;  %v267_v37 = vld [vmem:[%s2873_s0 + $0x70] sm:$0xff]  ;;  %v270_v40 = vld [vmem:[%s2873_s0 + $0x88] sm:$0xff]  ;;  %v272_v42 = vld [vmem:[%s2873_s0 + $0x98] sm:$0xff] }
  0x1a   : > { %1723 = vmatprep.mubr.msk.f32.mxu0 %vm289_vm0, %v255_v19  ;;  %v271_v41 = vld [vmem:[%s2873_s0 + $0x90] sm:$0xff]  ;;  %v273_v43 = vld [vmem:[%s2873_s0 + $0xa0] sm:$0xff]  ;;  %v274_v44 = vld [vmem:[%s2873_s0 + $0xa8] sm:$0xff] }
  0x1b   : > { %v275_v45 = vld [vmem:[%s2873_s0 + $0xb0] sm:$0xff]  ;;  %v276_v46 = vld [vmem:[%s2873_s0 + $0xb8] sm:$0xff]  ;;  %v277_v47 = vld [vmem:[%s2873_s0 + $0xc0] sm:$0xff] }
  0x1c   : > { %742 = vperm.xlu1 %1834, %v691_v5   ;;  %737 = vperm.xlu0 %1833, %v690_v8   ;;  %v278_v48 = vld [vmem:[%s2873_s0 + $0xc8] sm:$0xff]  ;;  %v279_v49 = vld [vmem:[%s2873_s0 + $0xd0] sm:$0xff]  ;;  %v280_v50 = vld [vmem:[%s2873_s0 + $0xd8] sm:$0xff] }
  0x1d   : > { %1724 = vmatmul.mubr.msk.f32.gmra.mrb[2].mxu0 %vm289_vm0, %v256_v22  ;;  %v281_v51 = vld [vmem:[%s2873_s0 + $0xe0] sm:$0xff]  ;;  %v282_v52 = vld [vmem:[%s2873_s0 + $0xe8] sm:$0xff]  ;;  %v283_v53 = vld [vmem:[%s2873_s0 + $0xf0] sm:$0xff] }
  0x1e   : > { %1726 = vmatprep.mubr.msk.f32.mxu0 %vm289_vm0, %v257_v25  ;;  %v284_v54 = vld [vmem:[%s2873_s0 + $0xf8] sm:$0xff]  ;;  %v2186_v57 = vld [vmem:[%s2183_s13] sm:$0xff]  ;;  %v2189_v58 = vld [vmem:[%s2183_s13 + $0x8] sm:$0xff] }
  0x1f   : > { %v613_v59 = vld [vmem:[%s2183_s13 + $0x10] sm:$0xff]  ;;  %v614_v60 = vld [vmem:[%s2183_s13 + $0x18] sm:$0xff]  ;;  %v625_v63 = vunpack.c.3.s8 %v2186_v57  ;;  %v626_v0 = vunpack.c.3.s8 %v2189_v58  ;;  %v615_v1 = vld [vmem:[%s2183_s13 + $0x20] sm:$0xff] }
  0x20   : > { %752 = vperm.xlu1 %1834, %v693_v13   ;;  %747 = vperm.xlu0 %1833, %v692_v14   ;;  %v699_v2 = vld [vmem:[%s2876_s3] sm:$0x3]  ;;  %v627_v3 = vunpack.c.0.s8 %v613_v59  ;;  %v628_v4 = vunpack.c.0.s8 %v614_v60  ;;  %v629_v5 = vunpack.c.1.s8 %v613_v59  ;;  %v630_v6 = vunpack.c.1.s8 %v614_v60  ;;  %v616_v8 = vld [vmem:[%s2183_s13 + $0x28] sm:$0xff]  ;;  %v2219_v25 = vld [vmem:[%s2183_s13 + $0x30] sm:$0xff] }
  0x21   : > { %1727 = vmatmul.mubr.msk.f32.gmra.mrb[4].mxu0 %vm289_vm0, %v258_v26  ;;  %v631_v7 = vunpack.c.2.s8 %v613_v59  ;;  %v633_v9 = vunpack.c.3.s8 %v613_v59  ;;  %v634_v10 = vunpack.c.3.s8 %v614_v60  ;;  %v632_v11 = vunpack.c.2.s8 %v614_v60  ;;  %v2222_v26 = vld [vmem:[%s2183_s13 + $0x38] sm:$0xff] }
  0x22   : > { %1729 = vmatprep.mubr.msk.f32.mxu0 %vm289_vm0, %v259_v29  ;;  %v635_v12 = vunpack.c.0.s8 %v615_v1  ;;  %v2200_v13 = vrot.slane %v699_v2, %v783_v61  ;;  %v2202_v14 = vrot.slane %v699_v2, %v787_v62  ;;  %v2204_v15 = vcvt.s32.f32 %v625_v63 }
  0x23   : > { %v2210_v18 = vcvt.s32.f32 %v628_v4  ;;  %v637_v19 = vunpack.c.1.s8 %v615_v1  ;;  %v2214_v22 = vcvt.s32.f32 %v630_v6  ;;  %v2228_v29 = vcvt.s32.f32 %v632_v11 }
  0x24   : > { %762 = vperm.xlu1 %1834, %v695_v16   ;;  %757 = vperm.xlu0 %1833, %v694_v17   ;;  %v2206_v16 = vcvt.s32.f32 %v626_v0  ;;  %v2208_v17 = vcvt.s32.f32 %v627_v3  ;;  %vm925_vm1 = vcmp.gt.f32.partialorder %v2204_v15, 0.0  ;;  %v624_v60 = vunpack.c.2.s8 %v2189_v58 }
  0x25   : > { %1730 = vmatmul.mubr.msk.f32.gmra.mrb[6].mxu0 %vm289_vm0, %v260_v30  ;;  %v2230_v30 = vcvt.s32.f32 %v635_v12  ;;  %vm930_vm5 = vcmp.gt.f32.partialorder %v2214_v22, 0.0  ;;  %vm928_vm6 = vcmp.gt.f32.partialorder %v2210_v18, 0.0 }
  0x26   : > { %1732 = vmatprep.mubr.msk.f32.mxu0 %vm289_vm0, %v261_v31  ;;  %v641_v31 = vunpack.c.3.s8 %v615_v1  ;;  %vm926_vm2 = vcmp.gt.f32.partialorder %v2206_v16, 0.0  ;;  %vm927_vm4 = vcmp.gt.f32.partialorder %v2208_v17, 0.0  ;;  %v2292_v12 = vcvt.s32.f32 %v624_v60 }
  0x28   : > { %767 = vperm.xlu1 %1834, %v696_v20   ;;  %702 = vperm.xlu0 %1833, %v683_v21   ;;  %v636_v20 = vunpack.c.0.s8 %v616_v8  ;;  %v2212_v21 = vcvt.s32.f32 %v629_v5 }
  0x29   : > { %1733 = vmatmul.mubr.msk.f32.gmra.mrb[8].mxu0 %vm289_vm0, %v262_v32  ;;  %v642_v32 = vunpack.c.3.s8 %v616_v8 }
  0x2a   : > { %1735 = vmatprep.mubr.msk.f32.mxu0 %vm289_vm0, %v263_v33  ;;  %v639_v33 = vunpack.c.2.s8 %v615_v1  ;;  %vm929_vm3 = vcmp.gt.f32.partialorder %v2212_v21, 0.0 }
  0x2c   : > { %772 = vperm.xlu1 %1834, %v697_v23   ;;  %707 = vperm.xlu0 %1833, %v684_v24   ;;  %v2216_v23 = vcvt.s32.f32 %v631_v7  ;;  %v638_v24 = vunpack.c.1.s8 %v616_v8  ;;  %v649_v7 = vunpack.c.3.s8 %v2219_v25 }
  0x2d   : > { %1736 = vmatmul.mubr.msk.f32.gmra.mrb[10].mxu0 %vm289_vm0, %v264_v34  ;;  %v640_v34 = vunpack.c.2.s8 %v616_v8 }
  0x2e   : > { %1738 = vmatprep.mubr.msk.f32.mxu0 %vm289_vm0, %v265_v35  ;;  %v2232_v35 = vcvt.s32.f32 %v637_v19  ;;  %vm931_vm13 = vcmp.gt.f32.partialorder %v2216_v23, 0.0 }
  0x30   : > { %777 = vperm.xlu1 %1834, %v698_v27   ;;  %712 = vperm.xlu0 %1833, %v685_v28   ;;  %v2224_v27 = vcvt.s32.f32 %v633_v9  ;;  %v2226_v28 = vcvt.s32.f32 %v634_v10 }
  0x31   : > { %1739 = vmatmul.mubr.msk.f32.gmra.mrb[12].mxu0 %vm289_vm0, %v266_v36  ;;  %v2234_v36 = vcvt.s32.f32 %v636_v20 }
  0x32   : > { %1741 = vmatprep.mubr.msk.f32.mxu0 %vm289_vm0, %v267_v37  ;;  %v643_v37 = vunpack.c.0.s8 %v2219_v25  ;;  %vm933_vm11 = vcmp.gt.f32.partialorder %v2224_v27, 0.0  ;;  %vm934_vm12 = vcmp.gt.f32.partialorder %v2226_v28, 0.0 }
  0x35   : > { %1742 = vmatmul.mubr.msk.f32.gmra.mrb[14].mxu0 %vm289_vm0, %v268_v38  ;;  %v644_v38 = vunpack.c.0.s8 %v2222_v26 }
  0x36   : > { %1744 = vmatprep.mubr.msk.f32.mxu0 %vm289_vm0, %v269_v39  ;;  %v2238_v39 = vcvt.s32.f32 %v638_v24 }
  0x39   : > { %1745 = vmatmul.mubr.msk.f32.gmra.mrb[16].mxu0 %vm289_vm0, %v270_v40  ;;  %v619_v40 = vunpack.c.0.s8 %v2186_v57 }
  0x3a   : > { %1747 = vmatprep.mubr.msk.f32.mxu0 %vm289_vm0, %v271_v41  ;;  %v620_v41 = vunpack.c.0.s8 %v2189_v58 }
  0x3b   : > { %v2264_v55 = vcvt.s32.f32 %v619_v40 }
  0x3c   : > { %v2266_v56 = vcvt.s32.f32 %v620_v41 }
  0x3d   : > { %1748 = vmatmul.mubr.msk.f32.gmra.mrb[18].mxu0 %vm289_vm0, %v272_v42  ;;  %v645_v42 = vunpack.c.1.s8 %v2219_v25 }
  0x3e   : > { %1750 = vmatprep.mubr.msk.f32.mxu0 %vm289_vm0, %v273_v43  ;;  %v646_v43 = vunpack.c.1.s8 %v2222_v26 }
  0x3f   : > { %v2268_v59 = vcvt.s32.f32 %v645_v42 }
  0x40   : > { %v2271_v63 = vcvt.s32.f32 %v646_v43 }
  0x41   : > { %1751 = vmatmul.mubr.msk.f32.gmra.mrb[20].mxu0 %vm289_vm0, %v274_v44  ;;  %v621_v44 = vunpack.c.1.s8 %v2186_v57 }
  0x42   : > { %1753 = vmatprep.mubr.msk.f32.mxu0 %vm289_vm0, %v275_v45  ;;  %v622_v45 = vunpack.c.1.s8 %v2189_v58 }
  0x43   : > { %v2273_v0 = vcvt.s32.f32 %v621_v44 }
  0x44   : > { %v2275_v1 = vcvt.s32.f32 %v622_v45 }
  0x45   : > { %1754 = vmatmul.mubr.msk.f32.gmra.mrb[22].mxu0 %vm289_vm0, %v276_v46  ;;  %v647_v46 = vunpack.c.2.s8 %v2219_v25 }
  0x46   : > { %1756 = vmatprep.mubr.msk.f32.mxu0 %vm289_vm0, %v277_v47  ;;  %v2249_v47 = vcvt.s32.f32 %v641_v31 }
  0x47   : > { %v2277_v2 = vcvt.s32.f32 %v647_v46 }
  0x49   : > { %1757 = vmatmul.mubr.msk.f32.gmra.mrb[24].mxu0 %vm289_vm0, %v278_v48  ;;  %v2251_v48 = vcvt.s32.f32 %v642_v32 }
  0x4a   : > { %1759 = vmatprep.mubr.msk.f32.mxu0 %vm289_vm0, %v279_v49  ;;  %v2253_v49 = vcvt.s32.f32 %v639_v33 }
  0x4d   : > { %1760 = vmatmul.mubr.msk.f32.gmra.mrb[26].mxu0 %vm289_vm0, %v280_v50  ;;  %v2255_v50 = vcvt.s32.f32 %v640_v34 }
  0x4e   : > { %1762 = vmatprep.mubr.msk.f32.mxu0 %vm289_vm0, %v281_v51  ;;  %v2257_v51 = vcvt.s32.f32 %v643_v37 }
  0x51   : > { %1763 = vmatmul.mubr.msk.f32.gmra.mrb[28].mxu0 %vm289_vm0, %v282_v52  ;;  %v2259_v52 = vcvt.s32.f32 %v644_v38  ;;  %v2302_v38 = vcvt.s32.f32 %v649_v7 }
  0x52   : > { %1765 = vmatprep.mubr.msk.f32.mxu0 %vm289_vm0, %v283_v53  ;;  %v648_v53 = vunpack.c.2.s8 %v2222_v26 }
  0x54   : > { %v2285_v58 = vcvt.s32.f32 %v648_v53 }
  0x55   : > { %1766 = vmatmul.mubr.msk.f32.gmra.mrb[30].mxu0 %vm289_vm0, %v284_v54  ;;  %v623_v54 = vunpack.c.2.s8 %v2186_v57  ;;  %vm932_vm0 = vcmp.gt.f32.partialorder %v2228_v29, 0.0 }
  0x57   : > { %v2287_v6 = vcvt.s32.f32 %v623_v54 }
  0x93   : > { %v728_v61 = vpop.permute.xlu1 %727  ;;  %v718_v62 = vpop.permute.xlu0 %717 }
  0x94   : > { %v801_v57 = vadd.f32 %v2200_v13, %v728_v61  ;;  %v802_v3 = vadd.f32 %v2202_v14, %v728_v61  ;;  %v797_v4 = vadd.f32 %v2200_v13, %v718_v62  ;;  %v798_v5 = vadd.f32 %v2202_v14, %v718_v62 }
  0x96   : > { %v865_v9 = vmul.f32 0.2, %v801_v57  ;;  %v866_v10 = vmul.f32 0.2, %v802_v3  ;;  %v861_v11 = vmul.f32 0.2, %v797_v4 }
  0x97   : > { %v862_v19 = vmul.f32 0.2, %v798_v5  ;;  %v733_v20 = vpop.permute.xlu1 %732  ;;  %v723_v24 = vpop.permute.xlu0 %722  ;;  %vm829_vm7 = vcmp.gt.f32.partialorder %v797_v4, 0.0  ;;  %vm830_vm8 = vcmp.gt.f32.partialorder %v798_v5, 0.0  ;;  %vm833_vm9 = vcmp.gt.f32.partialorder %v801_v57, 0.0 }
  0x98   : > { %v2295_v31 = vadd.f32 %v2200_v13, %v733_v20  ;;  %v2298_v25 = vadd.f32 %v2202_v14, %v733_v20  ;;  %v799_v32 = vadd.f32 %v2200_v13, %v723_v24  ;;  %v800_v33 = vadd.f32 %v2202_v14, %v723_v24 }
  0x99   : > { %v893_v34 = vsel %vm829_vm7, %v797_v4, %v861_v11  ;;  %v894_v37 = vsel %vm830_vm8, %v798_v5, %v862_v19  ;;  %vm834_vm10 = vcmp.gt.f32.partialorder %v802_v3, 0.0  ;;  %v897_v43 = vsel %vm833_vm9, %v801_v57, %v865_v9 }
  0x9a   : > { %v2305_v40 = vmul.f32 0.2, %v2295_v31  ;;  %v2308_v41 = vmul.f32 0.2, %v2298_v25  ;;  %v863_v42 = vmul.f32 0.2, %v799_v32  ;;  %v898_v60 = vsel %vm834_vm10, %v802_v3, %v866_v10 }
  0x9b   : > { %v864_v44 = vmul.f32 0.2, %v800_v33  ;;  %v743_v45 = vpop.permute.xlu1 %742  ;;  %v738_v46 = vpop.permute.xlu0 %737  ;;  %v2314_v53 = vsel %vm925_vm1, %v893_v34, -9e+15  ;;  %v2318_v54 = vsel %vm926_vm2, %v894_v37, -9e+15 }
  0x9c   : > { %v2321_v61 = vadd.f32 %v2200_v13, %v743_v45  ;;  %v2324_v62 = vadd.f32 %v2202_v14, %v743_v45  ;;  %v805_v57 = vadd.f32 %v2200_v13, %v738_v46  ;;  %v806_v4 = vadd.f32 %v2202_v14, %v738_v46 }
  0x9d   : > { %v992_v15 = vmax.f32 %v2314_v53, %v2318_v54  ;;  %vm831_vm14 = vcmp.gt.f32.partialorder %v799_v32, 0.0  ;;  %vm832_vm15 = vcmp.gt.f32.partialorder %v800_v33, 0.0  ;;  %v2333_v16 = vsel %vm929_vm3, %v897_v43, -9e+15 }
  0x9e   : > { %v2337_v3 = vmul.f32 0.2, %v2321_v61  ;;  %v2340_v5 = vmul.f32 0.2, %v2324_v62  ;;  %v869_v7 = vmul.f32 0.2, %v805_v57  ;;  %v895_v9 = vsel %vm831_vm14, %v799_v32, %v863_v42 }
  0x9f   : > { %v870_v10 = vmul.f32 0.2, %v806_v4  ;;  %993 = vmax.xlane.f32.xlu0 %v992_v15  ;;  %v753_v11 = vpop.permute.xlu1 %752  ;;  %v748_v19 = vpop.permute.xlu0 %747  ;;  %v896_v20 = vsel %vm832_vm15, %v800_v33, %v864_v44  ;;  %v2344_v21 = vsel %vm927_vm4, %v895_v9, -9e+15  ;;  %v2348_v24 = vsel %vm930_vm5, %v898_v60, -9e+15 }
  0xa0   : > { %v2351_v34 = vadd.f32 %v2200_v13, %v753_v11  ;;  %v2354_v37 = vadd.f32 %v2202_v14, %v753_v11  ;;  %v809_v32 = vadd.f32 %v2200_v13, %v748_v19  ;;  %v810_v42 = vadd.f32 %v2202_v14, %v748_v19 }
  0xa1   : > { %vm937_vm1 = vcmp.gt.f32.partialorder %v2232_v35, 0.0  ;;  %vm938_vm2 = vcmp.gt.f32.partialorder %v2238_v39, 0.0  ;;  %v2362_v17 = vsel %vm928_vm6, %v896_v20, -9e+15  ;;  %v998_v22 = vmax.f32 %v2333_v16, %v2348_v24 }
  0xa2   : > { %2884 = vst [vmem:[#allocation2_spill] sm:$0xff] %v2362_v17  ;;  %vm837_vm3 = vcmp.gt.f32.partialorder %v805_v57, 0.0  ;;  %vm838_vm4 = vcmp.gt.f32.partialorder %v806_v4, 0.0  ;;  %v2367_v33 = vmul.f32 0.2, %v2351_v34  ;;  %v995_v45 = vmax.f32 %v2344_v21, %v2362_v17 }
  0xa3   : > { %v2370_v43 = vmul.f32 0.2, %v2354_v37  ;;  %v873_v44 = vmul.f32 0.2, %v809_v32  ;;  %v874_v46 = vmul.f32 0.2, %v810_v42  ;;  %999 = vmax.xlane.f32.xlu0 %v998_v22  ;;  %v763_v18 = vpop.permute.xlu1 %762  ;;  %v758_v60 = vpop.permute.xlu0 %757  ;;  %v901_v15 = vsel %vm837_vm3, %v805_v57, %v869_v7 }
  0xa4   : > { %v902_v9 = vsel %vm838_vm4, %v806_v4, %v870_v10  ;;  %vm835_vm5 = vcmp.gt.f32.partialorder %v2295_v31, 0.0  ;;  %vm935_vm6 = vcmp.gt.f32.partialorder %v2230_v30, 0.0  ;;  %vm936_vm7 = vcmp.gt.f32.partialorder %v2234_v36, 0.0  ;;  %996 = vmax.xlane.f32.xlu1 %v995_v45 }
  0xa5   : > { %v2378_v11 = vadd.f32 %v2200_v13, %v763_v18  ;;  %v2381_v19 = vadd.f32 %v2202_v14, %v763_v18  ;;  %v2384_v20 = vadd.f32 %v2200_v13, %v758_v60  ;;  %v2387_v22 = vadd.f32 %v2202_v14, %v758_v60 }
  0xa6   : > { %v2391_v57 = vsel %vm933_vm11, %v901_v15, -9e+15  ;;  %v2395_v4 = vsel %vm934_vm12, %v902_v9, -9e+15  ;;  %vm836_vm8 = vcmp.gt.f32.partialorder %v2298_v25, 0.0  ;;  %v899_v7 = vsel %vm835_vm5, %v2295_v31, %v2305_v40 }
  0xa7   : > { %2885 = vst [vmem:[#allocation3_spill] sm:$0xff] %v2391_v57  ;;  %2886 = vst [vmem:[#allocation4_spill] sm:$0xff] %v2395_v4  ;;  %v2401_v10 = vmul.f32 0.2, %v2378_v11  ;;  %v2404_v45 = vmul.f32 0.2, %v2381_v19  ;;  %v1004_v27 = vmax.f32 %v2391_v57, %v2395_v4  ;;  %v900_v60 = vsel %vm836_vm8, %v2298_v25, %v2308_v41  ;;  %v768_v40 = vpop.permute.xlu1 %767  ;;  %v703_v15 = vpop.permute.xlu0 %702 }
  0xa8   : > { %v877_v18 = vmul.f32 0.2, %v2384_v20  ;;  %vm941_vm9 = vcmp.gt.f32.partialorder %v2249_v47, 0.0  ;;  %v878_v28 = vmul.f32 0.2, %v2387_v22  ;;  %vm841_vm10 = vcmp.gt.f32.partialorder %v809_v32, 0.0 }
  0xa9   : > { %v2415_v31 = vsel %vm931_vm13, %v899_v7, -9e+15  ;;  %vm942_vm11 = vcmp.gt.f32.partialorder %v2251_v48, 0.0  ;;  %vm939_vm12 = vcmp.gt.f32.partialorder %v2253_v49, 0.0  ;;  %1005 = vmax.xlane.f32.xlu1 %v1004_v27  ;;  %v2421_v9 = vsel %vm932_vm0, %v900_v60, -9e+15 }
  0xaa   : > { %2887 = vst [vmem:[#allocation5_spill] sm:$0xff] %v2415_v31  ;;  %2888 = vst [vmem:[#allocation6_spill] sm:$0xff] %v2421_v9  ;;  %v2424_v8 = vadd.f32 %v2200_v13, %v768_v40  ;;  %v2427_v25 = vadd.f32 %v2202_v14, %v768_v40  ;;  %v2430_v23 = vadd.f32 %v2200_v13, %v703_v15  ;;  %vm940_vm13 = vcmp.gt.f32.partialorder %v2255_v50, 0.0 }
  0xab   : > { %v1001_v41 = vmax.f32 %v2415_v31, %v2421_v9  ;;  %v2436_v7 = vadd.f32 %v2202_v14, %v703_v15  ;;  %vm842_vm14 = vcmp.gt.f32.partialorder %v810_v42, 0.0  ;;  %v905_v29 = vsel %vm841_vm10, %v809_v32, %v873_v44  ;;  %v773_v44 = vpop.permute.xlu1 %772  ;;  %v708_v9 = vpop.permute.xlu0 %707 }
  0xac   : > { %v2439_v27 = vmul.f32 0.2, %v2424_v8  ;;  %v2442_v60 = vmul.f32 0.2, %v2427_v25  ;;  %v2445_v40 = vmul.f32 0.2, %v2430_v23  ;;  %v906_v4 = vsel %vm842_vm14, %v810_v42, %v874_v46 }
  0xad   : > { %1002 = vmax.xlane.f32.xlu0 %v1001_v41  ;;  %v2448_v57 = vmul.f32 0.2, %v2436_v7  ;;  %v2452_v15 = vsel %vm937_vm1, %v905_v29, -9e+15  ;;  %v2456_v32 = vsel %vm938_vm2, %v906_v4, -9e+15  ;;  %v2889_v31 = vunpack.c.3.s8 %v2222_v26 }
  0xae   : > { %vm943_vm15 = vcmp.gt.f32.partialorder %v2257_v51, 0.0  ;;  %v1010_v42 = vmax.f32 %v2452_v15, %v2456_v32  ;;  %vm839_vm0 = vcmp.gt.f32.partialorder %v2321_v61, 0.0  ;;  %vm840_vm1 = vcmp.gt.f32.partialorder %v2324_v62, 0.0 }
  0xaf   : > { %v2461_v17 = vcvt.s32.f32 %v2889_v31  ;;  %v2468_v35 = vadd.f32 %v2200_v13, %v773_v44  ;;  %vm944_vm2 = vcmp.gt.f32.partialorder %v2259_v52, 0.0  ;;  %v903_v39 = vsel %vm839_vm0, %v2321_v61, %v2337_v3  ;;  %v778_v36 = vpop.permute.xlu1 %777 }
  0xb0   : > { %v904_v26 = vsel %vm840_vm1, %v2324_v62, %v2340_v5  ;;  %v2476_v46 = vadd.f32 %v2202_v14, %v773_v44  ;;  %v2479_v4 = vadd.f32 %v2200_v13, %v708_v9  ;;  %vm919_vm3 = vcmp.gt.f32.partialorder %v2264_v55, 0.0  ;;  %1011 = vmax.xlane.f32.xlu1 %v1010_v42  ;;  %v713_v44 = vpop.permute.xlu0 %712 }
  0xb1   : > { %v2484_v31 = vsel %vm935_vm6, %v903_v39, -9e+15  ;;  %v2488_v41 = vsel %vm936_vm7, %v904_v26, -9e+15  ;;  %v2491_v61 = vmul.f32 0.2, %v2468_v35  ;;  %v2494_v62 = vadd.f32 %v2202_v14, %v708_v9 }
  0xb2   : > { %vm920_vm4 = vcmp.gt.f32.partialorder %v2266_v56, 0.0  ;;  %v1007_v3 = vmax.f32 %v2484_v31, %v2488_v41  ;;  %v2500_v5 = vmul.f32 0.2, %v2476_v46  ;;  %v2503_v30 = vmul.f32 0.2, %v2479_v4 }
  0xb3   : > { %vm845_vm5 = vcmp.gt.f32.partialorder %v2384_v20, 0.0  ;;  %vm945_vm6 = vcmp.gt.f32.partialorder %v2268_v59, 0.0  ;;  %vm946_vm7 = vcmp.gt.f32.partialorder %v2271_v63, 0.0  ;;  %v858_v9 = vmul.f32 0.2, %v2494_v62 }
  0xb4   : > { %vm846_vm8 = vcmp.gt.f32.partialorder %v2387_v22, 0.0  ;;  %v909_v29 = vsel %vm845_vm5, %v2384_v20, %v877_v18  ;;  %vm843_vm10 = vcmp.gt.f32.partialorder %v2351_v34, 0.0  ;;  %1008 = vmax.xlane.f32.xlu0 %v1007_v3  ;;  %vm844_vm14 = vcmp.gt.f32.partialorder %v2354_v37, 0.0 }
  0xb5   : > { %v910_v42 = vsel %vm846_vm8, %v2387_v22, %v878_v28  ;;  %v2515_v39 = vsel %vm941_vm9, %v909_v29, -9e+15  ;;  %v907_v26 = vsel %vm843_vm10, %v2351_v34, %v2367_v33  ;;  %vm921_vm0 = vcmp.gt.f32.partialorder %v2273_v0, 0.0 }
  0xb6   : > { %vm922_vm1 = vcmp.gt.f32.partialorder %v2275_v1, 0.0  ;;  %v2524_v20 = vsel %vm942_vm11, %v910_v42, -9e+15  ;;  %v908_v22 = vsel %vm844_vm14, %v2354_v37, %v2370_v43  ;;  %v2530_v47 = vsel %vm939_vm12, %v907_v26, -9e+15 }
  0xb7   : > { %v2533_v18 = vadd.f32 %v2200_v13, %v778_v36  ;;  %vm947_vm9 = vcmp.gt.f32.partialorder %v2277_v2, 0.0  ;;  %v1016_v34 = vmax.f32 %v2515_v39, %v2524_v20  ;;  %v2540_v48 = vsel %vm940_vm13, %v908_v22, -9e+15 }
  0xb8   : > { %v2543_v33 = vadd.f32 %v2202_v14, %v778_v36  ;;  %v795_v37 = vadd.f32 %v2200_v13, %v713_v44  ;;  %vm948_vm11 = vcmp.gt.f32.partialorder %v2285_v58, 0.0  ;;  %v1013_v49 = vmax.f32 %v2530_v47, %v2540_v48 }
  0xb9   : > { %v885_v43 = vmul.f32 0.2, %v2533_v18  ;;  %v796_v28 = vadd.f32 %v2202_v14, %v713_v44  ;;  %vm847_vm12 = vcmp.gt.f32.partialorder %v2378_v11, 0.0  ;;  %1017 = vmax.xlane.f32.xlu1 %v1016_v34  ;;  %vm848_vm13 = vcmp.gt.f32.partialorder %v2381_v19, 0.0 }
  0xba   : > { %v886_v50 = vmul.f32 0.2, %v2543_v33  ;;  %v859_v3 = vmul.f32 0.2, %v795_v37  ;;  %v911_v13 = vsel %vm847_vm12, %v2378_v11, %v2401_v10  ;;  %vm924_vm8 = vcmp.gt.f32.partialorder %v2292_v12, 0.0  ;;  %1014 = vmax.xlane.f32.xlu0 %v1013_v49 }
  0xbb   : > { %v860_v36 = vmul.f32 0.2, %v796_v28  ;;  %v912_v14 = vsel %vm848_vm13, %v2381_v19, %v2404_v45  ;;  %v2562_v29 = vsel %vm943_vm15, %v911_v13, -9e+15  ;;  %vm823_vm10 = vcmp.gt.f32.partialorder %v2430_v23, 0.0 }
  0xbc   : > { %vm949_vm14 = vcmp.gt.f32.partialorder %v2302_v38, 0.0  ;;  %vm950_vm5 = vcmp.gt.f32.partialorder %v2461_v17, 0.0  ;;  %v2569_v11 = vsel %vm944_vm2, %v912_v14, -9e+15  ;;  %vm824_vm12 = vcmp.gt.f32.partialorder %v2436_v7, 0.0 }
  0xbd   : > { %v887_v10 = vsel %vm823_vm10, %v2430_v23, %v2445_v40  ;;  %vm849_vm13 = vcmp.gt.f32.partialorder %v2424_v8, 0.0  ;;  %v1019_v51 = vmax.f32 %v2562_v29, %v2569_v11  ;;  %v888_v19 = vsel %vm824_vm12, %v2436_v7, %v2448_v57 }
  0xbe   : > { %v2581_v45 = vsel %vm919_vm3, %v887_v10, -9e+15  ;;  %vm850_vm15 = vcmp.gt.f32.partialorder %v2427_v25, 0.0  ;;  %v2586_v52 = vsel %vm920_vm4, %v888_v19, -9e+15  ;;  %v913_v23 = vsel %vm849_vm13, %v2424_v8, %v2439_v27 }
  0xbf   : > { %v914_v40 = vsel %vm850_vm15, %v2427_v25, %v2442_v60  ;;  %vm825_vm2 = vcmp.gt.f32.partialorder %v2479_v4, 0.0  ;;  %1020 = vmax.xlane.f32.xlu0 %v1019_v51  ;;  %v983_v55 = vmax.f32 %v2581_v45, %v2586_v52  ;;  %v2597_v57 = vsel %vm945_vm6, %v913_v23, -9e+15 }
  0xc0   : > { %v2601_v56 = vsel %vm946_vm7, %v914_v40, -9e+15  ;;  %vm826_vm3 = vcmp.gt.f32.partialorder %v2494_v62, 0.0  ;;  %v889_v25 = vsel %vm825_vm2, %v2479_v4, %v2503_v30  ;;  %vm851_vm4 = vcmp.gt.f32.partialorder %v2468_v35, 0.0 }
  0xc1   : > { %v1022_v8 = vmax.f32 %v2597_v57, %v2601_v56  ;;  %v890_v7 = vsel %vm826_vm3, %v2494_v62, %v858_v9  ;;  %984 = vmax.xlane.f32.xlu1 %v983_v55  ;;  %v2612_v59 = vsel %vm921_vm0, %v889_v25, -9e+15  ;;  %vm852_vm6 = vcmp.gt.f32.partialorder %v2476_v46, 0.0 }
  0xc2   : > { %v2616_v63 = vsel %vm922_vm1, %v890_v7, -9e+15  ;;  %v915_v27 = vsel %vm851_vm4, %v2468_v35, %v2491_v61  ;;  %v916_v4 = vsel %vm852_vm6, %v2476_v46, %v2500_v5  ;;  %vm827_vm7 = vcmp.gt.f32.partialorder %v795_v37, 0.0 }
  0xc3   : > { %v986_v60 = vmax.f32 %v2612_v59, %v2616_v63  ;;  %v2627_v0 = vsel %vm947_vm9, %v915_v27, -9e+15  ;;  %1023 = vmax.xlane.f32.xlu0 %v1022_v8  ;;  %v2631_v1 = vsel %vm948_vm11, %v916_v4, -9e+15  ;;  %vm828_vm0 = vcmp.gt.f32.partialorder %v796_v28, 0.0 }
  0xc4   : > { %v891_v62 = vsel %vm827_vm7, %v795_v37, %v859_v3  ;;  %vm853_vm1 = vcmp.gt.f32.partialorder %v2533_v18, 0.0  ;;  %v892_v35 = vsel %vm828_vm0, %v796_v28, %v860_v36  ;;  %vm2890_vm10 = vcmp.gt.f32.partialorder %v2287_v6, 0.0 }
  0xc5   : > { %v2636_v61 = vsel %vm2890_vm10, %v891_v62, -9e+15  ;;  %vm854_vm12 = vcmp.gt.f32.partialorder %v2543_v33, 0.0  ;;  %987 = vmax.xlane.f32.xlu1 %v986_v60  ;;  %v1025_v2 = vmax.f32 %v2627_v0, %v2631_v1  ;;  %v2643_v58 = vsel %vm924_vm8, %v892_v35, -9e+15 }
  0xc6   : > { %v917_v46 = vsel %vm853_vm1, %v2533_v18, %v885_v43  ;;  %v918_v5 = vsel %vm854_vm12, %v2543_v33, %v886_v50  ;;  %v989_v30 = vmax.f32 %v2636_v61, %v2643_v58  ;;  %vm1448_vm9 = vcmask 523264  }
  0xc7   : > { %v2651_v6 = vsel %vm949_vm14, %v917_v46, -9e+15  ;;  %v2655_v9 = vsel %vm950_vm5, %v918_v5, -9e+15  ;;  %1026 = vmax.xlane.f32.xlu0 %v1025_v2 }
  0xc8   : > { %v1028_v12 = vmax.f32 %v2651_v6, %v2655_v9 }
  0xc9   : > { %990 = vmax.xlane.f32.xlu1 %v989_v30 }
  0xcb   : > { %1029 = vmax.xlane.f32.xlu0 %v1028_v12 }
  0xec   : > { %v1722_v44 = vpop.f32.mrb[0].mxu0 }
  0xed   : > { %v452_v42 = vpop.f32.mrb[1].mxu0 }
  0xee   : > { %v1778_v26 = vpack.c.bf16 %v1722_v44, %v452_v42 }
  0xf0   : > { %v1725_v22 = vpop.f32.mrb[2].mxu0 }
  0xf1   : > { %v462_v18 = vpop.f32.mrb[3].mxu0 }
  0xf2   : > { %v1782_v34 = vpack.c.bf16 %v1725_v22, %v462_v18 }
  0xf4   : > { %v1728_v33 = vpop.f32.mrb[4].mxu0 }
  0xf5   : > { %v472_v38 = vpop.f32.mrb[5].mxu0 }
  0xf6   : > { %v1786_v37 = vpack.c.bf16 %v1728_v33, %v472_v38 }
  0xf8   : > { %v1731_v49 = vpop.f32.mrb[6].mxu0 }
  0xf9   : > { %v482_v43 = vpop.f32.mrb[7].mxu0 }
  0xfa   : > { %v1790_v17 = vpack.c.bf16 %v1731_v49, %v482_v43 }
  0xfc   : > { %v1734_v28 = vpop.f32.mrb[8].mxu0 }
  0xfd   : > { %v492_v50 = vpop.f32.mrb[9].mxu0 }
  0xfe   : > { %v1794_v3 = vpack.c.bf16 %v1734_v28, %v492_v50 }
 0x100   : > { %v1737_v13 = vpop.f32.mrb[10].mxu0 }
 0x101   : > { %v502_v36 = vpop.f32.mrb[11].mxu0 }
 0x102   : > { %v2659_v14 = vpack.c.bf16 %v1737_v13, %v502_v36 }
 0x104   : > { %v1740_v10 = vpop.f32.mrb[12].mxu0 }
 0x105   : > { %v512_v51 = vpop.f32.mrb[13].mxu0 }
 0x106   : > { %v2661_v19 = vpack.c.bf16 %v1740_v10, %v512_v51 }
 0x108   : > { %v1743_v23 = vpop.f32.mrb[14].mxu0 }
 0x109   : > { %v522_v40 = vpop.f32.mrb[15].mxu0 }
 0x10a   : > { %v2663_v55 = vpack.c.bf16 %v1743_v23, %v522_v40 }
 0x10c   : > { %v1746_v8 = vpop.f32.mrb[16].mxu0 }
 0x10d   : > { %v532_v25 = vpop.f32.mrb[17].mxu0 }
 0x10e   : > { %v1776_v7 = vpack.c.bf16 %v1746_v8, %v532_v25  ;;  %v2893_v25 = vld [vmem:[#allocation4_spill] sm:$0xff] }
 0x110   : > { %v1749_v27 = vpop.f32.mrb[18].mxu0  ;;  %1777 = vmatprep.subr.bf16.mxu0 %v1776_v7  ;;  %1808 = vmatprep.subr.bf16.mxu1 %v1776_v7 }
 0x111   : > { %v542_v60 = vpop.f32.mrb[19].mxu0  ;;  %1779 = vmatpush3.bf16.msra.mxu0 %v1778_v26  ;;  %1816 = vmatpush3.bf16.msra.mxu1 %v1778_v26 }
 0x112   : > { %v1780_v4 = vpack.c.bf16 %v1749_v27, %v542_v60 }
 0x114   : > { %v1752_v62 = vpop.f32.mrb[20].mxu0  ;;  %1781 = vmatprep.subr.bf16.mxu0 %v1780_v4  ;;  %1809 = vmatprep.subr.bf16.mxu1 %v1780_v4 }
 0x115   : > { %v552_v35 = vpop.f32.mrb[21].mxu0  ;;  %1783 = vmatpush3.bf16.msra.mxu0 %v1782_v34  ;;  %1817 = vmatpush3.bf16.msra.mxu1 %v1782_v34 }
 0x116   : > { %v1784_v2 = vpack.c.bf16 %v1752_v62, %v552_v35  ;;  %v2894_v62 = vld [vmem:[#allocation5_spill] sm:$0xff] }
 0x118   : > { %v1755_v46 = vpop.f32.mrb[22].mxu0  ;;  %1785 = vmatprep.subr.bf16.mxu0 %v1784_v2  ;;  %1810 = vmatprep.subr.bf16.mxu1 %v1784_v2  ;;  %v2895_v2 = vld [vmem:[#allocation6_spill] sm:$0xff] }
 0x119   : > { %v562_v5 = vpop.f32.mrb[23].mxu0  ;;  %1787 = vmatpush3.bf16.msra.mxu0 %v1786_v37  ;;  %1818 = vmatpush3.bf16.msra.mxu1 %v1786_v37 }
 0x11a   : > { %v1788_v30 = vpack.c.bf16 %v1755_v46, %v562_v5 }
 0x11c   : > { %v1758_v26 = vpop.f32.mrb[24].mxu0  ;;  %1789 = vmatprep.subr.bf16.mxu0 %v1788_v30  ;;  %1811 = vmatprep.subr.bf16.mxu1 %v1788_v30 }
 0x11d   : > { %v572_v22 = vpop.f32.mrb[25].mxu0  ;;  %1791 = vmatpush3.bf16.msra.mxu0 %v1790_v17  ;;  %1819 = vmatpush3.bf16.msra.mxu1 %v1790_v17 }
 0x11e   : > { %v1792_v33 = vpack.c.bf16 %v1758_v26, %v572_v22 }
 0x120   : > { %v1761_v28 = vpop.f32.mrb[26].mxu0  ;;  %1793 = vmatprep.subr.bf16.mxu0 %v1792_v33  ;;  %1812 = vmatprep.subr.bf16.mxu1 %v1792_v33 }
 0x121   : > { %v582_v13 = vpop.f32.mrb[27].mxu0  ;;  %1795 = vmatpush3.bf16.msra.mxu0 %v1794_v3  ;;  %1820 = vmatpush3.bf16.msra.mxu1 %v1794_v3 }
 0x122   : > { %v1796_v36 = vpack.c.bf16 %v1761_v28, %v582_v13 }
 0x124   : > { %v1764_v40 = vpop.f32.mrb[28].mxu0  ;;  %1797 = vmatprep.subr.bf16.mxu0 %v1796_v36  ;;  %1813 = vmatprep.subr.bf16.mxu1 %v1796_v36 }
 0x125   : > { %v592_v7 = vpop.f32.mrb[29].mxu0  ;;  %1799 = vmatpush3.bf16.msra.mxu0 %v2659_v14  ;;  %1821 = vmatpush3.bf16.msra.mxu1 %v2659_v14 }
 0x126   : > { %v1800_v3 = vpack.c.bf16 %v1764_v40, %v592_v7 }
 0x128   : > { %v1767_v5 = vpop.f32.mrb[30].mxu0  ;;  %1801 = vmatprep.subr.bf16.mxu0 %v1800_v3  ;;  %1814 = vmatprep.subr.bf16.mxu1 %v1800_v3 }
 0x129   : > { %v602_v30 = vpop.f32.mrb[31].mxu0  ;;  %1803 = vmatpush3.bf16.msra.mxu0 %v2661_v19  ;;  %1822 = vmatpush3.bf16.msra.mxu1 %v2661_v19 }
 0x12a   : > { %v1804_v26 = vpack.c.bf16 %v1767_v5, %v602_v30 }
 0x12c   : > { %v994_v12 = vpop.xlane.xlu0 %993  ;;  %1805 = vmatprep.subr.bf16.mxu0 %v1804_v26  ;;  %1815 = vmatprep.subr.bf16.mxu1 %v1804_v26 }
 0x12d   : > { %v1037_v44 = vsub.f32 %v2314_v53, %v994_v12  ;;  %v1038_v42 = vsub.f32 %v2318_v54, %v994_v12  ;;  %v2891_v54 = vld [vmem:[#allocation2_spill] sm:$0xff]  ;;  %1807 = vmatpush3.bf16.msra.mxu0 %v2663_v55  ;;  %1823 = vmatpush3.bf16.msra.mxu1 %v2663_v55 }
 0x12f   : > { %v1075_v18 = vmul.f32 1.442695, %v1037_v44  ;;  %v1077_v34 = vmul.f32 1.442695, %v1038_v42 }
 0x130   : > { %v1000_v38 = vpop.xlane.xlu0 %999 }
 0x131   : > { %1835 = vpow2.f32 %v1075_v18  ;;  %v997_v49 = vpop.xlane.xlu1 %996  ;;  %v1041_v37 = vsub.f32 %v2333_v16, %v1000_v38  ;;  %v1042_v43 = vsub.f32 %v2348_v24, %v1000_v38  ;;  %v2892_v24 = vld [vmem:[#allocation3_spill] sm:$0xff] }
 0x132   : > { %1837 = vpow2.f32 %v1077_v34  ;;  %v1039_v53 = vsub.f32 %v2344_v21, %v997_v49  ;;  %v1040_v50 = vsub.f32 %v2891_v54, %v997_v49 }
 0x133   : > { %v1083_v17 = vmul.f32 1.442695, %v1041_v37  ;;  %v1085_v23 = vmul.f32 1.442695, %v1042_v43 }
 0x134   : > { %v1079_v10 = vmul.f32 1.442695, %v1039_v53  ;;  %v1081_v51 = vmul.f32 1.442695, %v1040_v50 }
 0x135   : > { %1839 = vpow2.f32 %v1083_v17 }
 0x136   : > { %v1006_v16 = vpop.xlane.xlu1 %1005  ;;  %1841 = vpow2.f32 %v1079_v10 }
 0x137   : > { %v1045_v8 = vsub.f32 %v2892_v24, %v1006_v16  ;;  %v1046_v21 = vsub.f32 %v2893_v25, %v1006_v16  ;;  %1843 = vpow2.f32 %v1081_v51 }
 0x138   : > { %1845 = vpow2.f32 %v1085_v23 }
 0x139   : > { %v1091_v27 = vmul.f32 1.442695, %v1045_v8  ;;  %v1093_v60 = vmul.f32 1.442695, %v1046_v21 }
 0x13a   : > { %v1003_v4 = vpop.xlane.xlu0 %1002 }
 0x13b   : > { %v1043_v35 = vsub.f32 %v2894_v62, %v1003_v4  ;;  %v1044_v46 = vsub.f32 %v2895_v2, %v1003_v4  ;;  %1847 = vpow2.f32 %v1091_v27  ;;  %v2679_v14 = vpop.eup %1835 }
 0x13c   : > { %1849 = vpow2.f32 %v1093_v60  ;;  %v2681_v22 = vpop.eup %1837 }
 0x13d   : > { %v1087_v12 = vmul.f32 1.442695, %v1043_v35  ;;  %v1089_v44 = vmul.f32 1.442695, %v1044_v46  ;;  %v1012_v42 = vpop.xlane.xlu1 %1011  ;;  %v1136_v33 = vadd.f32 %v2681_v22, %v2679_v14 }
 0x13e   : > { %v1049_v18 = vsub.f32 %v2452_v15, %v1012_v42  ;;  %v1050_v34 = vsub.f32 %v2456_v32, %v1012_v42 }
 0x13f   : > { %1851 = vpow2.f32 %v1087_v12  ;;  %v2689_v37 = vpop.eup %1839  ;;  %1137 = vadd.xlane.f32.xlu1 %v1136_v33 }
 0x140   : > { %1853 = vpow2.f32 %v1089_v44  ;;  %v1099_v19 = vmul.f32 1.442695, %v1049_v18  ;;  %v1101_v38 = vmul.f32 1.442695, %v1050_v34  ;;  %v2693_v43 = vpop.eup %1841 }
 0x141   : > { %v1009_v49 = vpop.xlane.xlu0 %1008  ;;  %v2695_v28 = vpop.eup %1843 }
 0x142   : > { %v1047_v15 = vsub.f32 %v2484_v31, %v1009_v49  ;;  %v1048_v32 = vsub.f32 %v2488_v41, %v1009_v49  ;;  %1855 = vpow2.f32 %v1099_v19  ;;  %v2697_v50 = vpop.eup %1845  ;;  %v1139_v55 = vadd.f32 %v2695_v28, %v2693_v43 }
 0x143   : > { %1857 = vpow2.f32 %v1101_v38  ;;  %v1142_v36 = vadd.f32 %v2697_v50, %v2689_v37 }
 0x144   : > { %v1095_v53 = vmul.f32 1.442695, %v1047_v15  ;;  %v1097_v54 = vmul.f32 1.442695, %v1048_v32  ;;  %1140 = vadd.xlane.f32.xlu0 %v1139_v55 }
 0x145   : > { %v2705_v10 = vpop.eup %1847  ;;  %1143 = vadd.xlane.f32.xlu1 %v1142_v36 }
 0x146   : > { %v1018_v13 = vpop.xlane.xlu1 %1017  ;;  %1859 = vpow2.f32 %v1095_v53  ;;  %v2709_v16 = vpop.eup %1849 }
 0x147   : > { %v1053_v31 = vsub.f32 %v2515_v39, %v1018_v13  ;;  %v1054_v41 = vsub.f32 %v2524_v20, %v1018_v13  ;;  %v1015_v17 = vpop.xlane.xlu0 %1014  ;;  %1861 = vpow2.f32 %v1097_v54  ;;  %v1148_v20 = vadd.f32 %v2709_v16, %v2705_v10 }
 0x148   : > { %v1051_v51 = vsub.f32 %v2530_v47, %v1015_v17  ;;  %v1052_v23 = vsub.f32 %v2540_v48, %v1015_v17 }
 0x149   : > { %v1107_v40 = vmul.f32 1.442695, %v1053_v31  ;;  %v1109_v24 = vmul.f32 1.442695, %v1054_v41  ;;  %v2713_v25 = vpop.eup %1851  ;;  %1149 = vadd.xlane.f32.xlu1 %v1148_v20 }
 0x14a   : > { %v1103_v39 = vmul.f32 1.442695, %v1051_v51  ;;  %v1105_v8 = vmul.f32 1.442695, %v1052_v23  ;;  %v2715_v7 = vpop.eup %1853 }
 0x14b   : > { %1863 = vpow2.f32 %v1107_v40  ;;  %v1145_v27 = vadd.f32 %v2715_v7, %v2713_v25 }
 0x14c   : > { %v1021_v21 = vpop.xlane.xlu0 %1020  ;;  %1865 = vpow2.f32 %v1109_v24  ;;  %v2721_v60 = vpop.eup %1855 }
 0x14d   : > { %v1055_v47 = vsub.f32 %v2562_v29, %v1021_v21  ;;  %v1056_v48 = vsub.f32 %v2569_v11, %v1021_v21  ;;  %1867 = vpow2.f32 %v1103_v39  ;;  %v2725_v2 = vpop.eup %1857  ;;  %1146 = vadd.xlane.f32.xlu0 %v1145_v27 }
 0x14e   : > { %v985_v3 = vpop.xlane.xlu1 %984  ;;  %1869 = vpow2.f32 %v1105_v8 }
 0x14f   : > { %v1031_v4 = vsub.f32 %v2581_v45, %v985_v3  ;;  %v1032_v62 = vsub.f32 %v2586_v52, %v985_v3  ;;  %v1111_v35 = vmul.f32 1.442695, %v1055_v47  ;;  %v1113_v46 = vmul.f32 1.442695, %v1056_v48 }
 0x150   : > { %v1024_v29 = vpop.xlane.xlu0 %1023  ;;  %v2728_v12 = vpop.eup %1859  ;;  %v1154_v45 = vadd.f32 %v2725_v2, %v2721_v60 }
 0x151   : > { %v1063_v11 = vmul.f32 1.442695, %v1031_v4  ;;  %v1065_v5 = vmul.f32 1.442695, %v1032_v62  ;;  %1871 = vpow2.f32 %v1111_v35  ;;  %v1057_v30 = vsub.f32 %v2597_v57, %v1024_v29  ;;  %v2733_v52 = vpop.eup %1861 }
 0x152   : > { %1873 = vpow2.f32 %v1113_v46  ;;  %v988_v44 = vpop.xlane.xlu1 %987  ;;  %v1058_v42 = vsub.f32 %v2601_v56, %v1024_v29  ;;  %1155 = vadd.xlane.f32.xlu1 %v1154_v45  ;;  %v1151_v19 = vadd.f32 %v2733_v52, %v2728_v12 }
 0x153   : > { %1875 = vpow2.f32 %v1063_v11  ;;  %v1033_v26 = vsub.f32 %v2612_v59, %v988_v44  ;;  %v1034_v18 = vsub.f32 %v2616_v63, %v988_v44  ;;  %v1115_v34 = vmul.f32 1.442695, %v1057_v30 }
 0x154   : > { %1877 = vpow2.f32 %v1065_v5  ;;  %v1117_v33 = vmul.f32 1.442695, %v1058_v42  ;;  %v1027_v57 = vpop.xlane.xlu0 %1026  ;;  %1152 = vadd.xlane.f32.xlu0 %v1151_v19 }
 0x155   : > { %v1067_v38 = vmul.f32 1.442695, %v1033_v26  ;;  %v1069_v56 = vmul.f32 1.442695, %v1034_v18  ;;  %1879 = vpow2.f32 %v1115_v34  ;;  %v1059_v49 = vsub.f32 %v2627_v0, %v1027_v57  ;;  %v2740_v15 = vpop.eup %1863 }
 0x156   : > { %1881 = vpow2.f32 %v1117_v33  ;;  %v991_v32 = vpop.xlane.xlu1 %990  ;;  %v1060_v59 = vsub.f32 %v2631_v1, %v1027_v57  ;;  %v2743_v63 = vpop.eup %1865 }
 0x157   : > { %1883 = vpow2.f32 %v1067_v38  ;;  %v1035_v53 = vsub.f32 %v2636_v61, %v991_v32  ;;  %v1036_v54 = vsub.f32 %v2643_v58, %v991_v32  ;;  %v1119_v13 = vmul.f32 1.442695, %v1059_v49  ;;  %v2747_v55 = vpop.eup %1867 }
 0x158   : > { %1885 = vpow2.f32 %v1069_v56  ;;  %v1121_v31 = vmul.f32 1.442695, %v1060_v59  ;;  %v1030_v0 = vpop.xlane.xlu0 %1029  ;;  %v1160_v41 = vadd.f32 %v2743_v63, %v2740_v15  ;;  %v2751_v17 = vpop.eup %1869 }
 0x159   : > { %v1071_v1 = vmul.f32 1.442695, %v1035_v53  ;;  %v1073_v36 = vmul.f32 1.442695, %v1036_v54  ;;  %1887 = vpow2.f32 %v1119_v13  ;;  %v1061_v51 = vsub.f32 %v2651_v6, %v1030_v0 }
 0x15a   : > { %1889 = vpow2.f32 %v1121_v31  ;;  %v1062_v61 = vsub.f32 %v2655_v9, %v1030_v0  ;;  %1161 = vadd.xlane.f32.xlu1 %v1160_v41  ;;  %v1157_v58 = vadd.f32 %v2751_v17, %v2747_v55 }
 0x15b   : > { %v2757_v23 = vpop.eup %1871  ;;  %1891 = vpow2.f32 %v1071_v1  ;;  %v1123_v40 = vmul.f32 1.442695, %v1061_v51 }
 0x15c   : > { %v2759_v24 = vpop.eup %1873  ;;  %1893 = vpow2.f32 %v1073_v36  ;;  %v1125_v39 = vmul.f32 1.442695, %v1062_v61  ;;  %1158 = vadd.xlane.f32.xlu0 %v1157_v58 }
 0x15d   : > { %v2761_v8 = vpop.eup %1875  ;;  %1895 = vpow2.f32 %v1123_v40  ;;  %v1163_v6 = vadd.f32 %v2759_v24, %v2757_v23 }
 0x15e   : > { %v2765_v9 = vpop.eup %1877  ;;  %1897 = vpow2.f32 %v1125_v39 }
 0x15f   : > { %v2767_v20 = vpop.eup %1879  ;;  %v1127_v21 = vadd.f32 %v2765_v9, %v2761_v8 }
 0x160   : > { %v2771_v47 = vpop.eup %1881  ;;  %1164 = vadd.xlane.f32.xlu0 %v1163_v6 }
 0x161   : > { %v2773_v48 = vpop.eup %1883  ;;  %1128 = vadd.xlane.f32.xlu1 %v1127_v21  ;;  %v1166_v3 = vadd.f32 %v2771_v47, %v2767_v20 }
 0x162   : > { %v2777_v27 = vpop.eup %1885 }
 0x163   : > { %v2779_v4 = vpop.eup %1887  ;;  %v1130_v62 = vadd.f32 %v2777_v27, %v2773_v48 }
 0x164   : > { %v2783_v35 = vpop.eup %1889  ;;  %1167 = vadd.xlane.f32.xlu0 %v1166_v3 }
 0x165   : > { %v2785_v46 = vpop.eup %1891  ;;  %1131 = vadd.xlane.f32.xlu1 %v1130_v62  ;;  %v1169_v29 = vadd.f32 %v2783_v35, %v2779_v4 }
 0x166   : > { %v2789_v11 = vpop.eup %1893 }
 0x167   : > { %v2791_v5 = vpop.eup %1895  ;;  %v1133_v30 = vadd.f32 %v2789_v11, %v2785_v46 }
 0x168   : > { %v2795_v44 = vpop.eup %1897  ;;  %1170 = vadd.xlane.f32.xlu0 %v1169_v29 }
 0x169   : > { %1134 = vadd.xlane.f32.xlu1 %v1133_v30  ;;  %v1172_v42 = vadd.f32 %v2795_v44, %v2791_v5 }
 0x16c   : > { %1173 = vadd.xlane.f32.xlu0 %v1172_v42 }
 0x1cc   : > { %v1138_v45 = vpop.xlane.xlu1 %1137 }
 0x1cd   : > { %1899 = vrcp.f32 %v1138_v45 }
 0x1d1   : > { %v1141_v26 = vpop.xlane.xlu0 %1140 }
 0x1d2   : > { %v1144_v18 = vpop.xlane.xlu1 %1143  ;;  %1901 = vrcp.f32 %v1141_v26 }
 0x1d3   : > { %1903 = vrcp.f32 %v1144_v18 }
 0x1d6   : > { %v1150_v33 = vpop.xlane.xlu1 %1149 }
 0x1d7   : > { %v1900_v34 = vpop.eup %1899 }
 0x1d8   : > { %v1198_v19 = vmul.f32 %v1900_v34, %v2681_v22  ;;  %v1197_v38 = vmul.f32 %v1900_v34, %v2679_v14 }
 0x1da   : > { %v1147_v57 = vpop.xlane.xlu0 %1146  ;;  %1302 = vmatprep.mubr.f32.mxu1 %v1198_v19 }
 0x1db   : > { %1905 = vrcp.f32 %v1147_v57  ;;  %1303 = vmatmul.mubr.f32.vlgmr.msra.gmra.mrb[0].mxu1 %v1197_v38 }
 0x1dc   : > { %1907 = vrcp.f32 %v1150_v33  ;;  %v1902_v56 = vpop.eup %1901 }
 0x1dd   : > { %v1904_v49 = vpop.eup %1903  ;;  %v1200_v59 = vmul.f32 %v1902_v56, %v2695_v28  ;;  %v1199_v53 = vmul.f32 %v1902_v56, %v2693_v43 }
 0x1de   : > { %v1202_v13 = vmul.f32 %v1904_v49, %v2697_v50  ;;  %v1201_v14 = vmul.f32 %v1904_v49, %v2689_v37 }
 0x1df   : > { %v1156_v32 = vpop.xlane.xlu1 %1155  ;;  %1307 = vmatprep.mubr.f32.mxu1 %v1200_v59 }
 0x1e0   : > { %1308 = vmatmul.mubr.f32.gmra.mrb[2].mxu1 %v1199_v53 }
 0x1e1   : > { %v1153_v54 = vpop.xlane.xlu0 %1152  ;;  %1312 = vmatprep.mubr.f32.mxu1 %v1202_v13 }
 0x1e2   : > { %1909 = vrcp.f32 %v1153_v54 }
 0x1e3   : > { %1911 = vrcp.f32 %v1156_v32 }
 0x1e4   : > { %1313 = vmatmul.mubr.f32.gmra.mrb[4].mxu1 %v1201_v14 }
 0x1e5   : > { %v1906_v22 = vpop.eup %1905 }
 0x1e6   : > { %v1908_v0 = vpop.eup %1907  ;;  %v1204_v1 = vmul.f32 %v1906_v22, %v2715_v7  ;;  %v1203_v43 = vmul.f32 %v1906_v22, %v2713_v25 }
 0x1e7   : > { %v1162_v31 = vpop.xlane.xlu1 %1161  ;;  %v1206_v28 = vmul.f32 %v1908_v0, %v2709_v16  ;;  %v1205_v37 = vmul.f32 %v1908_v0, %v2705_v10 }
 0x1e8   : > { %1317 = vmatprep.mubr.f32.mxu1 %v1204_v1 }
 0x1e9   : > { %v1159_v41 = vpop.xlane.xlu0 %1158  ;;  %1318 = vmatmul.mubr.f32.gmra.mrb[6].mxu1 %v1203_v43 }
 0x1ea   : > { %1913 = vrcp.f32 %v1159_v41  ;;  %1322 = vmatprep.mubr.f32.mxu1 %v1206_v28 }
 0x1eb   : > { %1915 = vrcp.f32 %v1162_v31 }
 0x1ec   : > { %v1910_v50 = vpop.eup %1909 }
 0x1ed   : > { %v1165_v36 = vpop.xlane.xlu0 %1164  ;;  %v1208_v61 = vmul.f32 %v1910_v50, %v2733_v52  ;;  %v1912_v58 = vpop.eup %1911  ;;  %1323 = vmatmul.mubr.f32.gmra.mrb[8].mxu1 %v1205_v37  ;;  %v1207_v16 = vmul.f32 %v1910_v50, %v2728_v12 }
 0x1ee   : > { %v1129_v51 = vpop.xlane.xlu1 %1128  ;;  %v1210_v25 = vmul.f32 %v1912_v58, %v2725_v2  ;;  %v1209_v10 = vmul.f32 %v1912_v58, %v2721_v60 }
 0x1ef   : > { %1917 = vrcp.f32 %v1129_v51  ;;  %1327 = vmatprep.mubr.f32.mxu1 %v1208_v61 }
 0x1f0   : > { %1919 = vrcp.f32 %v1165_v36 }
 0x1f1   : > { %v1168_v40 = vpop.xlane.xlu0 %1167  ;;  %1328 = vmatmul.mubr.f32.gmra.mrb[10].mxu1 %v1207_v16 }
 0x1f2   : > { %v1132_v7 = vpop.xlane.xlu1 %1131  ;;  %1332 = vmatprep.mubr.f32.mxu1 %v1210_v25 }
 0x1f3   : > { %1921 = vrcp.f32 %v1132_v7 }
 0x1f4   : > { %v1914_v39 = vpop.eup %1913  ;;  %1923 = vrcp.f32 %v1168_v40 }
 0x1f5   : > { %v1171_v21 = vpop.xlane.xlu0 %1170  ;;  %v1916_v52 = vpop.eup %1915  ;;  %v1212_v3 = vmul.f32 %v1914_v39, %v2751_v17  ;;  %1333 = vmatmul.mubr.f32.gmra.mrb[12].mxu1 %v1209_v10  ;;  %v1211_v2 = vmul.f32 %v1914_v39, %v2747_v55 }
 0x1f6   : > { %v1135_v6 = vpop.xlane.xlu1 %1134  ;;  %v1214_v45 = vmul.f32 %v1916_v52, %v2743_v63 }
 0x1f7   : > { %1925 = vrcp.f32 %v1135_v6  ;;  %1337 = vmatprep.mubr.f32.mxu1 %v1212_v3 }
 0x1f8   : > { %1927 = vrcp.f32 %v1171_v21 }
 0x1f9   : > { %v1918_v62 = vpop.eup %1917  ;;  %v1174_v42 = vpop.xlane.xlu0 %1173  ;;  %1338 = vmatmul.mubr.f32.gmra.mrb[14].mxu1 %v1211_v2 }
 0x1fa   : > { %v1191_v29 = vmul.f32 %v1918_v62, %v2761_v8  ;;  %v1192_v12 = vmul.f32 %v1918_v62, %v2765_v9  ;;  %v1920_v30 = vpop.eup %1919  ;;  %1342 = vmatprep.mubr.f32.mxu1 %v1214_v45  ;;  %1929 = vrcp.f32 %v1174_v42  ;;  %v1213_v8 = vmul.f32 %v1916_v52, %v2740_v15 }
 0x1fb   : > { %v1216_v55 = vmul.f32 %v1920_v30, %v2759_v24 }
 0x1fc   : > { %1287 = vmatprep.mubr.f32.mxu0 %v1192_v12 }
 0x1fd   : > { %v1922_v26 = vpop.eup %1921  ;;  %1288 = vmatmul.mubr.f32.vlgmr.msra.gmra.mrb[32].mxu0 %v1191_v29  ;;  %1343 = vmatmul.mubr.f32.gmra.mrb[16].mxu1 %v1213_v8 }
 0x1fe   : > { %v1194_v60 = vmul.f32 %v1922_v26, %v2777_v27  ;;  %v1193_v17 = vmul.f32 %v1922_v26, %v2773_v48  ;;  %v1924_v9 = vpop.eup %1923  ;;  %1347 = vmatprep.mubr.f32.mxu1 %v1216_v55  ;;  %v1215_v27 = vmul.f32 %v1920_v30, %v2757_v23 }
 0x1ff   : > { %v1218_v48 = vmul.f32 %v1924_v9, %v2771_v47  ;;  %v1217_v15 = vmul.f32 %v1924_v9, %v2767_v20 }
 0x200   : > { %1292 = vmatprep.mubr.f32.mxu0 %v1194_v60 }
 0x201   : > { %v1926_v18 = vpop.eup %1925  ;;  %1293 = vmatmul.mubr.f32.gmra.mrb[34].mxu0 %v1193_v17  ;;  %1348 = vmatmul.mubr.f32.gmra.mrb[18].mxu1 %v1215_v27 }
 0x202   : > { %v1196_v63 = vmul.f32 %v1926_v18, %v2789_v11  ;;  %v1195_v34 = vmul.f32 %v1926_v18, %v2785_v46  ;;  %v1928_v33 = vpop.eup %1927  ;;  %1352 = vmatprep.mubr.f32.mxu1 %v1218_v48 }
 0x203   : > { %v1220_v24 = vmul.f32 %v1928_v33, %v2783_v35  ;;  %v1219_v11 = vmul.f32 %v1928_v33, %v2779_v4 }
 0x204   : > { %1297 = vmatprep.mubr.f32.mxu0 %v1196_v63  ;;  %v1930_v57 = vpop.eup %1929 }
 0x205   : > { %1298 = vmatmul.mubr.f32.gmra.mrb[36].mxu0 %v1195_v34  ;;  %1353 = vmatmul.mubr.f32.gmra.mrb[20].mxu1 %v1217_v15  ;;  %v1222_v46 = vmul.f32 %v1930_v57, %v2795_v44  ;;  %v1221_v23 = vmul.f32 %v1930_v57, %v2791_v5 }
 0x206   : > { %1357 = vmatprep.mubr.f32.mxu1 %v1220_v24 }
 0x209   : > { %1358 = vmatmul.mubr.f32.gmra.mrb[22].mxu1 %v1219_v11 }
 0x20a   : > { %1362 = vmatprep.mubr.f32.mxu1 %v1222_v46 }
 0x20d   : > { %1363 = vmatmul.mubr.f32.gmra.mrb[24].mxu1 %v1221_v23 }
 0x2ae   : > { %v1673_v47 = vpop.f32.mrb[0].mxu1 }
 0x2af   : > { %v1674_v19 = vpop.f32.mrb[1].mxu1 }
 0x2b0   : > { %v1675_v38 = vadd.f32 %v1674_v19, %v1673_v47 }
 0x2b2   : > { %v1390_v56 = vmul.f32 1.442695, %v1675_v38  ;;  %vm1371_vm11 = vcmp.gt.f32.partialorder %v1675_v38, 0.0 }
 0x2b3   : > { %v1676_v20 = vpop.f32.mrb[2].mxu1 }
 0x2b4   : > { %1931 = vpow2.f32 %v1390_v56  ;;  %v1677_v35 = vpop.f32.mrb[3].mxu1 }
 0x2b5   : > { %v1678_v49 = vadd.f32 %v1677_v35, %v1676_v20 }
 0x2b7   : > { %v1392_v32 = vmul.f32 1.442695, %v1678_v49  ;;  %v1679_v59 = vpop.f32.mrb[4].mxu1  ;;  %vm1372_vm5 = vcmp.gt.f32.partialorder %v1678_v49, 0.0 }
 0x2b8   : > { %v1680_v53 = vpop.f32.mrb[5].mxu1 }
 0x2b9   : > { %1933 = vpow2.f32 %v1392_v32  ;;  %v1681_v4 = vadd.f32 %v1680_v53, %v1679_v59 }
 0x2bb   : > { %v1394_v44 = vmul.f32 1.442695, %v1681_v4  ;;  %vm1373_vm8 = vcmp.gt.f32.partialorder %v1681_v4, 0.0 }
 0x2bc   : > { %v1682_v54 = vpop.f32.mrb[6].mxu1 }
 0x2bd   : > { %v1683_v13 = vpop.f32.mrb[7].mxu1  ;;  %1935 = vpow2.f32 %v1394_v44 }
 0x2be   : > { %v1684_v5 = vadd.f32 %v1683_v13, %v1682_v54  ;;  %v1932_v14 = vpop.eup %1931 }
 0x2bf   : > { %v1580_v22 = vadd.f32 -1.0, %v1932_v14 }
 0x2c0   : > { %v1396_v31 = vmul.f32 1.442695, %v1684_v5  ;;  %v1685_v0 = vpop.f32.mrb[8].mxu1  ;;  %vm1374_vm14 = vcmp.gt.f32.partialorder %v1684_v5, 0.0 }
 0x2c1   : > { %v1686_v41 = vpop.f32.mrb[9].mxu1  ;;  %v1435_v1 = vsel %vm1371_vm11, %v1675_v38, %v1580_v22 }
 0x2c2   : > { %1937 = vpow2.f32 %v1396_v31  ;;  %v1687_v43 = vadd.f32 %v1686_v41, %v1685_v0  ;;  %1452 = vst.msk [vmem:[%s2836_s17 + $0x18] sm:$0xff] %vm1448_vm9, %v1435_v1 }
 0x2c3   : > { %v1934_v28 = vpop.eup %1933 }
 0x2c4   : > { %v1398_v36 = vmul.f32 1.442695, %v1687_v43  ;;  %v1688_v50 = vpop.f32.mrb[10].mxu1  ;;  %v1581_v51 = vadd.f32 -1.0, %v1934_v28  ;;  %vm1375_vm13 = vcmp.gt.f32.partialorder %v1687_v43, 0.0 }
 0x2c5   : > { %v1689_v37 = vpop.f32.mrb[11].mxu1 }
 0x2c6   : > { %1939 = vpow2.f32 %v1398_v36  ;;  %v1690_v61 = vadd.f32 %v1689_v37, %v1688_v50  ;;  %v1436_v58 = vsel %vm1372_vm5, %v1678_v49, %v1581_v51 }
 0x2c7   : > { %v1936_v40 = vpop.eup %1935  ;;  %1453 = vst.msk [vmem:[%s2836_s17 + $0x20] sm:$0xff] %vm1448_vm9, %v1436_v58 }
 0x2c8   : > { %v1400_v7 = vmul.f32 1.442695, %v1690_v61  ;;  %v1691_v16 = vpop.f32.mrb[12].mxu1  ;;  %v1582_v25 = vadd.f32 -1.0, %v1936_v40  ;;  %vm1376_vm15 = vcmp.gt.f32.partialorder %v1690_v61, 0.0 }
 0x2c9   : > { %v1692_v39 = vpop.f32.mrb[13].mxu1 }
 0x2ca   : > { %1941 = vpow2.f32 %v1400_v7  ;;  %v1693_v6 = vadd.f32 %v1692_v39, %v1691_v16  ;;  %v1437_v21 = vsel %vm1373_vm8, %v1681_v4, %v1582_v25 }
 0x2cb   : > { %1454 = vst.msk [vmem:[%s2836_s17 + $0x28] sm:$0xff] %vm1448_vm9, %v1437_v21 }
 0x2cc   : > { %v1938_v10 = vpop.eup %1937  ;;  %v1402_v3 = vmul.f32 1.442695, %v1693_v6  ;;  %v1694_v62 = vpop.f32.mrb[14].mxu1  ;;  %vm1377_vm2 = vcmp.gt.f32.partialorder %v1693_v6, 0.0 }
 0x2cd   : > { %v1583_v29 = vadd.f32 -1.0, %v1938_v10  ;;  %v1695_v2 = vpop.f32.mrb[15].mxu1 }
 0x2ce   : > { %1943 = vpow2.f32 %v1402_v3  ;;  %v1696_v42 = vadd.f32 %v1695_v2, %v1694_v62 }
 0x2cf   : > { %v1438_v45 = vsel %vm1374_vm14, %v1684_v5, %v1583_v29 }
 0x2d0   : > { %v1664_v52 = vpop.f32.mrb[32].mxu0  ;;  %v1940_v26 = vpop.eup %1939  ;;  %1455 = vst.msk [vmem:[%s2836_s17 + $0x30] sm:$0xff] %vm1448_vm9, %v1438_v45  ;;  %v1404_v18 = vmul.f32 1.442695, %v1696_v42  ;;  %vm1378_vm4 = vcmp.gt.f32.partialorder %v1696_v42, 0.0 }
 0x2d1   : > { %v1665_v12 = vpop.f32.mrb[33].mxu0  ;;  %v1697_v8 = vpop.f32.mrb[16].mxu1  ;;  %v1584_v9 = vadd.f32 -1.0, %v1940_v26 }
 0x2d2   : > { %v1666_v30 = vadd.f32 %v1665_v12, %v1664_v52  ;;  %v1698_v63 = vpop.f32.mrb[17].mxu1 }
 0x2d3   : > { %v1699_v27 = vadd.f32 %v1698_v63, %v1697_v8  ;;  %v1439_v48 = vsel %vm1375_vm13, %v1687_v43, %v1584_v9 }
 0x2d4   : > { %v1384_v60 = vmul.f32 1.442695, %v1666_v30  ;;  %v1667_v17 = vpop.f32.mrb[34].mxu0  ;;  %v1942_v33 = vpop.eup %1941  ;;  %1456 = vst.msk [vmem:[%s2836_s17 + $0x38] sm:$0xff] %vm1448_vm9, %v1439_v48  ;;  %vm1368_vm3 = vcmp.gt.f32.partialorder %v1666_v30, 0.0 }
 0x2d5   : > { %v1668_v55 = vpop.f32.mrb[35].mxu0  ;;  %v1700_v57 = vpop.f32.mrb[18].mxu1  ;;  %v1585_v11 = vadd.f32 -1.0, %v1942_v33  ;;  %v1406_v23 = vmul.f32 1.442695, %v1699_v27  ;;  %vm1379_vm7 = vcmp.gt.f32.partialorder %v1699_v27, 0.0 }
 0x2d6   : > { %1945 = vpow2.f32 %v1384_v60  ;;  %v1669_v34 = vadd.f32 %v1668_v55, %v1667_v17  ;;  %v1701_v47 = vpop.f32.mrb[19].mxu1 }
 0x2d7   : > { %1947 = vpow2.f32 %v1404_v18  ;;  %v1702_v38 = vadd.f32 %v1701_v47, %v1700_v57  ;;  %v1440_v56 = vsel %vm1376_vm15, %v1690_v61, %v1585_v11 }
 0x2d8   : > { %v1386_v15 = vmul.f32 1.442695, %v1669_v34  ;;  %v1670_v24 = vpop.f32.mrb[36].mxu0  ;;  %v1944_v20 = vpop.eup %1943  ;;  %1457 = vst.msk [vmem:[%s2836_s17 + $0x40] sm:$0xff] %vm1448_vm9, %v1440_v56  ;;  %vm1369_vm6 = vcmp.gt.f32.partialorder %v1669_v34, 0.0 }
 0x2d9   : > { %v1671_v46 = vpop.f32.mrb[37].mxu0  ;;  %v1408_v49 = vmul.f32 1.442695, %v1702_v38  ;;  %v1586_v32 = vadd.f32 -1.0, %v1944_v20  ;;  %v1703_v59 = vpop.f32.mrb[20].mxu1  ;;  %vm1380_vm1 = vcmp.gt.f32.partialorder %v1702_v38, 0.0 }
 0x2da   : > { %1949 = vpow2.f32 %v1386_v15  ;;  %v1672_v19 = vadd.f32 %v1671_v46, %v1670_v24  ;;  %v1704_v53 = vpop.f32.mrb[21].mxu1 }
 0x2db   : > { %1951 = vpow2.f32 %v1406_v23  ;;  %v1441_v4 = vsel %vm1377_vm2, %v1693_v6, %v1586_v32  ;;  %v1705_v44 = vadd.f32 %v1704_v53, %v1703_v59 }
 0x2dc   : > { %v1388_v35 = vmul.f32 1.442695, %v1672_v19  ;;  %1458 = vst.msk [vmem:[%s2836_s17 + $0x48] sm:$0xff] %vm1448_vm9, %v1441_v4  ;;  %v1706_v13 = vpop.f32.mrb[22].mxu1  ;;  %vm1370_vm0 = vcmp.gt.f32.partialorder %v1672_v19, 0.0 }
 0x2dd   : > { %v1410_v22 = vmul.f32 1.442695, %v1705_v44  ;;  %v1707_v31 = vpop.f32.mrb[23].mxu1  ;;  %vm1381_vm10 = vcmp.gt.f32.partialorder %v1705_v44, 0.0 }
 0x2de   : > { %1953 = vpow2.f32 %v1388_v35  ;;  %v1708_v41 = vadd.f32 %v1707_v31, %v1706_v13 }
 0x2df   : > { %1955 = vpow2.f32 %v1408_v49 }
 0x2e0   : > { %v1946_v54 = vpop.eup %1945  ;;  %1957 = vpow2.f32 %v1410_v22  ;;  %v1412_v36 = vmul.f32 1.442695, %v1708_v41  ;;  %v1709_v50 = vpop.f32.mrb[24].mxu1  ;;  %vm1382_vm12 = vcmp.gt.f32.partialorder %v1708_v41, 0.0 }
 0x2e1   : > { %v1948_v5 = vpop.eup %1947  ;;  %v1577_v14 = vadd.f32 -1.0, %v1946_v54  ;;  %v1710_v61 = vpop.f32.mrb[25].mxu1 }
 0x2e2   : > { %v1587_v0 = vadd.f32 -1.0, %v1948_v5  ;;  %1959 = vpow2.f32 %v1412_v36  ;;  %v1711_v40 = vadd.f32 %v1710_v61, %v1709_v50 }
 0x2e3   : > { %v1432_v1 = vsel %vm1368_vm3, %v1666_v30, %v1577_v14 }
 0x2e4   : > { %v1950_v43 = vpop.eup %1949  ;;  %1449 = vst.msk [vmem:[%s2836_s17] sm:$0xff] %vm1448_vm9, %v1432_v1  ;;  %v1442_v28 = vsel %vm1378_vm4, %v1696_v42, %v1587_v0  ;;  %v1414_v39 = vmul.f32 1.442695, %v1711_v40  ;;  %vm1383_vm11 = vcmp.gt.f32.partialorder %v1711_v40, 0.0 }
 0x2e5   : > { %v1952_v51 = vpop.eup %1951  ;;  %v1578_v37 = vadd.f32 -1.0, %v1950_v43  ;;  %1459 = vst.msk [vmem:[%s2836_s17 + $0x50] sm:$0xff] %vm1448_vm9, %v1442_v28 }
 0x2e6   : > { %v1588_v58 = vadd.f32 -1.0, %v1952_v51  ;;  %1961 = vpow2.f32 %v1414_v39 }
 0x2e7   : > { %v1433_v7 = vsel %vm1369_vm6, %v1669_v34, %v1578_v37 }
 0x2e8   : > { %v1954_v16 = vpop.eup %1953  ;;  %1450 = vst.msk [vmem:[%s2836_s17 + $0x8] sm:$0xff] %vm1448_vm9, %v1433_v7  ;;  %v1443_v25 = vsel %vm1379_vm7, %v1699_v27, %v1588_v58 }
 0x2e9   : > { %v1956_v6 = vpop.eup %1955  ;;  %v1579_v21 = vadd.f32 -1.0, %v1954_v16  ;;  %1460 = vst.msk [vmem:[%s2836_s17 + $0x58] sm:$0xff] %vm1448_vm9, %v1443_v25 }
 0x2ea   : > { %v1589_v10 = vadd.f32 -1.0, %v1956_v6  ;;  %v1958_v62 = vpop.eup %1957 }
 0x2eb   : > { %v1434_v52 = vsel %vm1370_vm0, %v1672_v19, %v1579_v21  ;;  %v1590_v29 = vadd.f32 -1.0, %v1958_v62 }
 0x2ec   : > { %1451 = vst.msk [vmem:[%s2836_s17 + $0x10] sm:$0xff] %vm1448_vm9, %v1434_v52  ;;  %v1444_v3 = vsel %vm1380_vm1, %v1702_v38, %v1589_v10  ;;  %v1960_v12 = vpop.eup %1959 }
 0x2ed   : > { %1461 = vst.msk [vmem:[%s2836_s17 + $0x60] sm:$0xff] %vm1448_vm9, %v1444_v3  ;;  %v1445_v2 = vsel %vm1381_vm10, %v1705_v44, %v1590_v29  ;;  %v1591_v30 = vadd.f32 -1.0, %v1960_v12 }
 0x2ee   : > { %1462 = vst.msk [vmem:[%s2836_s17 + $0x68] sm:$0xff] %vm1448_vm9, %v1445_v2 }
 0x2ef   : > { %v1446_v42 = vsel %vm1382_vm12, %v1708_v41, %v1591_v30 }
 0x2f0   : > { %v1962_v45 = vpop.eup %1961  ;;  %1463 = vst.msk [vmem:[%s2836_s17 + $0x70] sm:$0xff] %vm1448_vm9, %v1446_v42 }
 0x2f1   : > { %v1592_v26 = vadd.f32 -1.0, %v1962_v45 }
 0x2f3   : > { %v1447_v60 = vsel %vm1383_vm11, %v1711_v40, %v1592_v26 }
 0x2f4   : > { %1464 = vst.msk [vmem:[%s2836_s17 + $0x78] sm:$0xff] %vm1448_vm9, %v1447_v60 }
 0x2f5 PF: > { %s15_s18 = sadd.s32 1, %s1969_s18  }
 0x2f6   : > { %p12_p5 = scmp.ge.s32.totalorder %s15_s18, 4  }
 0x2f8   :  { %14 = sbr.rel (!%p12_p5) target bundleno = 1 (0x1), region = 73 }

</bundles_post_ra>
